<compile_context>
chip_gen: v7x
topology: tpu7x:2x2x1
jax: 0.10.0
libtpu: 0.0.40
codegen_flags: <defaults>
</compile_context>

<pallas_src>
import functools

import jax
import jax.numpy as jnp
from jax import lax
from jax.experimental import pallas as pl
from jax.experimental.pallas import tpu as pltpu


# ----------------------------------------------------------------------------
# shared traced helpers
# ----------------------------------------------------------------------------
def _adaptive_graph(e, wpool_flat, bpool, mm_dtype):
    """supports = softmax(relu(E E^T)), per-node weights/bias from the pools.

    e          [N, D]               (caller dtype, kept f32-precision for softmax)
    wpool_flat [D, K*Ci*Co]
    bpool      [D, Co]
    returns (supports [N,N] mm_dtype, w_flat [N,K*Ci*Co] mm_dtype, bias [N,Co] f32)
    """
    f32 = jnp.float32
    # E @ E^T via dot_general (contract dim 1 of both) -- no materialized transpose.
    logits = lax.dot_general(e, e, (((1,), (1,)), ((), ())),
                             preferred_element_type=f32)            # [N, N]
    logits = jnp.maximum(logits, 0.0)
    m = jnp.max(logits, axis=1, keepdims=True)
    p = jnp.exp(logits - m)
    row_sum = jnp.sum(p, axis=1, keepdims=True)
    # EUP approximate reciprocal + one Newton step (keeps ~f32 accuracy).
    r = pl.reciprocal(row_sum, approx=True)
    r = r * (2.0 - row_sum * r)
    supports = (p * r).astype(mm_dtype)                              # [N, N]

    w_flat = jnp.dot(e.astype(mm_dtype), wpool_flat.astype(mm_dtype),
                     preferred_element_type=f32).astype(mm_dtype)    # [N, K*Ci*Co]
    bias = jnp.dot(e, bpool, preferred_element_type=f32)             # [N, Co] f32
    return supports, w_flat, bias


def _cheb_gconv(x2, supports, w_flat, bias, *, cheb_k, c_in, c_out,
                mm_dtype, out_dtype):
    """Fused Chebyshev recursion + per-node weight contraction.

    x2       [N, bc*Ci]    lane-dense batch-fused input slab
    supports [N, N]        mm_dtype
    w_flat   [N, K*Ci*Co]  mm_dtype
    bias     [N, Co]       f32
    returns  [N, bc*Co]    out_dtype
    """
    f32 = jnp.float32
    N = x2.shape[0]
    bc = x2.shape[1] // c_in

    # Single reshape of the per-node weights; per-k access is a static slice.
    w3 = w_flat.reshape(N, cheb_k * c_in, c_out)                     # [N, K*Ci, Co]

    def contract(xg2_mm, k):
        # N independent [bc, Ci] x [Ci, Co] matmuls on the MXU (batched over n).
        xg3 = xg2_mm.reshape(N, bc, c_in)
        return jnp.einsum('nbi,nio->nbo', xg3,
                          w3[:, k * c_in:(k + 1) * c_in, :],
                          preferred_element_type=f32)                # [N, bc, Co]

    # T_0 x = x
    xg_prev = x2.astype(mm_dtype)                                    # [N, bc*Ci]
    acc = contract(xg_prev, 0)
    # T_1 x = S x
    xg_curr = jnp.dot(supports, xg_prev,
                      preferred_element_type=f32).astype(mm_dtype)
    acc = acc + contract(xg_curr, 1)
    # T_k x = 2 S (T_{k-1} x) - T_{k-2} x   (combine in f32, store slab in mm_dtype)
    for k in range(2, cheb_k):
        nxt = (2.0 * jnp.dot(supports, xg_curr, preferred_element_type=f32)
               - xg_prev.astype(f32))
        xg_prev, xg_curr = xg_curr, nxt.astype(mm_dtype)
        acc = acc + contract(xg_curr, k)

    out3 = acc + bias[:, None, :]                                    # [N, bc, Co] f32
    # One final reshape back to the lane-dense output slab.
    return out3.reshape(N, bc * c_out).astype(out_dtype)


# ----------------------------------------------------------------------------
# kernels
# ----------------------------------------------------------------------------
def avwgcn_fused_kernel(x_ref, e_ref, wpool_ref, bpool_ref, out_ref, *,
                        cheb_k, c_in, c_out, mm_dtype):
    """Single-chunk path: everything in one kernel (no HBM round trip)."""
    supports, w_flat, bias = _adaptive_graph(
        e_ref[...], wpool_ref[...], bpool_ref[...], mm_dtype)
    out_ref[...] = _cheb_gconv(x_ref[...], supports, w_flat, bias,
                               cheb_k=cheb_k, c_in=c_in, c_out=c_out,
                               mm_dtype=mm_dtype, out_dtype=out_ref.dtype)


def avwgcn_prep_kernel(e_ref, wpool_ref, bpool_ref,
                       supports_ref, w_ref, bias_ref, *, mm_dtype):
    """Multi-chunk path, stage 1: grid-invariant work computed exactly once."""
    supports, w_flat, bias = _adaptive_graph(
        e_ref[...], wpool_ref[...], bpool_ref[...], mm_dtype)
    supports_ref[...] = supports
    w_ref[...] = w_flat
    bias_ref[...] = bias


def avwgcn_chunk_kernel(x_ref, supports_ref, w_ref, bias_ref, out_ref, *,
                        cheb_k, c_in, c_out, mm_dtype):
    """Multi-chunk path, stage 2: per-batch-chunk Chebyshev graph conv."""
    out_ref[...] = _cheb_gconv(x_ref[...], supports_ref[...], w_ref[...],
                               bias_ref[...],
                               cheb_k=cheb_k, c_in=c_in, c_out=c_out,
                               mm_dtype=mm_dtype, out_dtype=out_ref.dtype)


# ----------------------------------------------------------------------------
# wrapper: chunk policy, VMEM sizing, pallas_call plumbing
# ----------------------------------------------------------------------------
def _vmem_capacity_bytes():
    try:
        return int(pltpu.get_tpu_info().vmem_capacity_bytes)
    except Exception:
        return 64 * 2**20  # conservative: v7x per-TensorCore VMEM


def _working_set_bytes(N, bc, c_in, c_out, cheb_k, mm_bytes, io_bytes):
    supports = N * N * mm_bytes
    weights = 2 * N * cheb_k * c_in * c_out * mm_bytes       # w_flat + reshaped view/copy
    slabs = N * bc * c_in * (2 * mm_bytes + 4)               # T_{k-1}, T_{k-2} + f32 temp
    acc = N * bc * c_out * 4
    bias = N * c_out * 4
    io = 2 * N * bc * (c_in + c_out) * io_bytes              # double-buffered x/out blocks
    return supports + weights + slabs + acc + bias + io


def _pick_batch_chunk(B, N, c_in, c_out, cheb_k, mm_bytes, io_bytes, budget):
    def fits(bc):
        return _working_set_bytes(N, bc, c_in, c_out, cheb_k,
                                  mm_bytes, io_bytes) <= budget

    # Single chunk whenever it fits: on v5e/v6e the grid is a serial loop, so
    # extra chunks only add per-step overhead + (without prep) recompute.
    if fits(B):
        return B
    ok = [bc for bc in range(B - 1, 0, -1)
          if B % bc == 0
          and (bc * c_in) % 128 == 0 and (bc * c_out) % 128 == 0
          and fits(bc)]
    if not ok:
        return B  # fall back to single chunk; vmem_limit is raised accordingly
    # v7x megacore: prefer an even number of chunks so both TensorCores get work.
    even = [bc for bc in ok if (B // bc) % 2 == 0]
    return (even or ok)[0]


def avwgcn(x, node_embeddings, weights_pool, bias_pool, cheb_k, *,
           mxu_dtype=jnp.bfloat16, batch_chunk=None):
    """AVWGCN forward.  x [B,N,Ci] -> [B,N,Co].

    mxu_dtype: dtype of the MXU operands inside the kernel (f32 accumulation).
               bf16 (default) for throughput; pass jnp.float32 for exact f32.
    """
    B, N, C_in = x.shape
    D, K, Ci, C_out = weights_pool.shape
    assert K == cheb_k and Ci == C_in and node_embeddings.shape == (N, D)
    assert cheb_k >= 2  # same implicit requirement as the PyTorch module

    f32 = jnp.float32
    mm_bytes = jnp.dtype(mxu_dtype).itemsize
    io_bytes = x.dtype.itemsize

    # Lane-dense, batch-fused layouts (layout plumbing stays in the wrapper).
    x_flat = jnp.transpose(x, (1, 0, 2)).reshape(N, B * C_in)        # [N, B*Ci]
    wpool_flat = weights_pool.reshape(D, cheb_k * C_in * C_out)      # [D, K*Ci*Co]

    vmem_cap = _vmem_capacity_bytes()
    if batch_chunk is not None:
        bc = int(batch_chunk)
        assert B % bc == 0
        assert bc == B or ((bc * C_in) % 128 == 0 and (bc * C_out) % 128 == 0), (
            "multi-chunk blocks must keep lane widths multiples of 128")
    else:
        bc = _pick_batch_chunk(B, N, C_in, C_out, cheb_k,
                               mm_bytes, io_bytes, budget=int(0.45 * vmem_cap))
    n_chunks = B // bc

    est = _working_set_bytes(N, bc, C_in, C_out, cheb_k, mm_bytes, io_bytes)
    vmem_limit = int(min(0.9 * vmem_cap, max(32 * 2**20, 1.5 * est)))

    if n_chunks == 1:
        # Everything fused in one kernel; no HBM round trip of supports/weights.
        out_flat = pl.pallas_call(
            functools.partial(avwgcn_fused_kernel, cheb_k=cheb_k,
                              c_in=C_in, c_out=C_out, mm_dtype=mxu_dtype),
            out_shape=jax.ShapeDtypeStruct((N, B * C_out), x.dtype),
            grid=(1,),
            in_specs=[
                pl.BlockSpec((N, B * C_in), lambda c: (0, 0)),
                pl.BlockSpec((N, D), lambda c: (0, 0)),
                pl.BlockSpec((D, cheb_k * C_in * C_out), lambda c: (0, 0)),
                pl.BlockSpec((D, C_out), lambda c: (0, 0)),
            ],
            out_specs=pl.BlockSpec((N, B * C_out), lambda c: (0, 0)),
            compiler_params=pltpu.CompilerParams(
                dimension_semantics=("arbitrary",),
                vmem_limit_bytes=vmem_limit),
        )(x_flat, node_embeddings, wpool_flat, bias_pool)
    else:
        # Stage 1: grid-invariant supports / per-node weights / bias, once.
        supports, w_flat, bias = pl.pallas_call(
            functools.partial(avwgcn_prep_kernel, mm_dtype=mxu_dtype),
            out_shape=(jax.ShapeDtypeStruct((N, N), mxu_dtype),
                       jax.ShapeDtypeStruct((N, cheb_k * C_in * C_out), mxu_dtype),
                       jax.ShapeDtypeStruct((N, C_out), f32)),
            grid=(1,),
            in_specs=[
                pl.BlockSpec((N, D), lambda c: (0, 0)),
                pl.BlockSpec((D, cheb_k * C_in * C_out), lambda c: (0, 0)),
                pl.BlockSpec((D, C_out), lambda c: (0, 0)),
            ],
            out_specs=(pl.BlockSpec((N, N), lambda c: (0, 0)),
                       pl.BlockSpec((N, cheb_k * C_in * C_out), lambda c: (0, 0)),
                       pl.BlockSpec((N, C_out), lambda c: (0, 0))),
            compiler_params=pltpu.CompilerParams(
                dimension_semantics=("arbitrary",),
                vmem_limit_bytes=vmem_limit),
        )(node_embeddings, wpool_flat, bias_pool)

        # Stage 2: batch-chunked Chebyshev graph conv; supports/w/bias use a
        # constant index_map so Pallas does not re-DMA them per chunk.
        out_flat = pl.pallas_call(
            functools.partial(avwgcn_chunk_kernel, cheb_k=cheb_k,
                              c_in=C_in, c_out=C_out, mm_dtype=mxu_dtype),
            out_shape=jax.ShapeDtypeStruct((N, B * C_out), x.dtype),
            grid=(n_chunks,),
            in_specs=[
                pl.BlockSpec((N, bc * C_in), lambda c: (0, c)),
                pl.BlockSpec((N, N), lambda c: (0, 0)),
                pl.BlockSpec((N, cheb_k * C_in * C_out), lambda c: (0, 0)),
                pl.BlockSpec((N, C_out), lambda c: (0, 0)),
            ],
            out_specs=pl.BlockSpec((N, bc * C_out), lambda c: (0, c)),
            compiler_params=pltpu.CompilerParams(
                dimension_semantics=("parallel",),
                vmem_limit_bytes=vmem_limit),
        )(x_flat, supports, w_flat, bias)

    return jnp.transpose(out_flat.reshape(N, B, C_out), (1, 0, 2))   # [B, N, Co]


# ----------------------------------------------------------------------------
# pure-JAX reference (mirrors the PyTorch forward)
# ----------------------------------------------------------------------------
def avwgcn_ref(x, e, wpool, bpool, cheb_k):
    N = e.shape[0]
    supports = jax.nn.softmax(jax.nn.relu(e @ e.T), axis=1)
    support_set = [jnp.eye(N, dtype=x.dtype), supports]
    for _ in range(2, cheb_k):
        support_set.append(2.0 * supports @ support_set[-1] - support_set[-2])
    supports = jnp.stack(support_set, axis=0)                        # [K, N, N]
    weights = jnp.einsum('nd,dkio->nkio', e, wpool)
    bias = e @ bpool
    x_g = jnp.einsum('knm,bmc->bknc', supports, x)
    x_g = jnp.transpose(x_g, (0, 2, 1, 3))                           # [B,N,K,Ci]
    return jnp.einsum('bnki,nkio->bno', x_g, weights) + bias


# ----------------------------------------------------------------------------
# demo / self-test
# ----------------------------------------------------------------------------
if __name__ == "__main__":
    def make_inputs(key, B, N, dim_in, dim_out, cheb_k, embed_dim):
        kx, ke, kw, kb = jax.random.split(key, 4)
        x = jax.random.normal(kx, (B, N, dim_in), dtype=jnp.float32)
        e = jax.random.normal(ke, (N, embed_dim), dtype=jnp.float32)
        # xavier_normal_-style init (matches PyTorch fan computation)
        fan_in_w = cheb_k * dim_in * dim_out
        fan_out_w = embed_dim * dim_in * dim_out
        std_w = (2.0 / (fan_in_w + fan_out_w)) ** 0.5
        wpool = std_w * jax.random.normal(
            kw, (embed_dim, cheb_k, dim_in, dim_out), dtype=jnp.float32)
        std_b = (2.0 / (embed_dim + dim_out)) ** 0.5
        bpool = std_b * jax.random.normal(
            kb, (embed_dim, dim_out), dtype=jnp.float32)
        return x, e, wpool, bpool

    # 1) Small shapes from the module spec; exact f32 MXU path, fused kernel.
    B, N, dim_in, dim_out, cheb_k, embed_dim = 2, 16, 4, 32, 3, 8
    x, e, wpool, bpool = make_inputs(jax.random.PRNGKey(0),
                                     B, N, dim_in, dim_out, cheb_k, embed_dim)
    out = jax.block_until_ready(
        avwgcn(x, e, wpool, bpool, cheb_k, mxu_dtype=jnp.float32))
    ref = avwgcn_ref(x, e, wpool, bpool, cheb_k)
    assert out.shape == (B, N, dim_out), out.shape
    assert jnp.allclose(out, ref, atol=5e-4, rtol=5e-4), (
        float(jnp.max(jnp.abs(out - ref))))

    # 2) Multi-chunk (prep + chunked, parallel grid) path, still exact f32.
    B2, N2, di2, do2 = 8, 16, 32, 32
    x2, e2, wp2, bp2 = make_inputs(jax.random.PRNGKey(1),
                                   B2, N2, di2, do2, cheb_k, embed_dim)
    out2 = jax.block_until_ready(
        avwgcn(x2, e2, wp2, bp2, cheb_k, mxu_dtype=jnp.float32, batch_chunk=4))
    ref2 = avwgcn_ref(x2, e2, wp2, bp2, cheb_k)
    assert jnp.allclose(out2, ref2, atol=2e-3, rtol=2e-3), (
        float(jnp.max(jnp.abs(out2 - ref2))))

    # 3) Default perf path: bf16 MXU operands, f32 accumulation (loose check).
    out3 = jax.block_until_ready(avwgcn(x2, e2, wp2, bp2, cheb_k))
    assert jnp.allclose(out3, ref2, atol=1e-1, rtol=1e-1), (
        float(jnp.max(jnp.abs(out3 - ref2))))

    print("KERNEL_OK")
</pallas_src>

<mosaic_0001>
module attributes {stable_mosaic.version = 11 : i64} {
  func.func @avwgcn_fused_kernel(%arg0: i32, %arg1: memref<16x8xf32, #tpu.memory_space<vmem>>, %arg2: memref<16x8xf32, #tpu.memory_space<vmem>>, %arg3: memref<8x384xf32, #tpu.memory_space<vmem>>, %arg4: memref<8x32xf32, #tpu.memory_space<vmem>>, %arg5: memref<16x64xf32, #tpu.memory_space<vmem>>) attributes {dimension_semantics = [#tpu.dimension_semantics<arbitrary>], iteration_bounds = array<i64: 1>, scalar_prefetch = 0 : i64, scratch_operands = 0 : i64, tpu.core_type = #tpu.core_type<tc>, window_params = [{pipeline_mode = #tpu.pipeline_mode<synchronous>, transform_indices = @transform_0, window_bounds = array<i64: 16, 8>}, {pipeline_mode = #tpu.pipeline_mode<synchronous>, transform_indices = @transform_1, window_bounds = array<i64: 16, 8>}, {pipeline_mode = #tpu.pipeline_mode<synchronous>, transform_indices = @transform_2, window_bounds = array<i64: 8, 384>}, {pipeline_mode = #tpu.pipeline_mode<synchronous>, transform_indices = @transform_3, window_bounds = array<i64: 8, 32>}, {pipeline_mode = #tpu.pipeline_mode<synchronous>, transform_indices = @transform_4, window_bounds = array<i64: 16, 64>}]} {
    %c0 = arith.constant 0 : index
    %c0_0 = arith.constant 0 : index
    %0 = vector.load %arg2[%c0, %c0_0] : memref<16x8xf32, #tpu.memory_space<vmem>>, vector<16x8xf32>
    %c0_1 = arith.constant 0 : index
    %c0_2 = arith.constant 0 : index
    %1 = vector.load %arg3[%c0_1, %c0_2] : memref<8x384xf32, #tpu.memory_space<vmem>>, vector<8x384xf32>
    %c0_3 = arith.constant 0 : index
    %c0_4 = arith.constant 0 : index
    %2 = vector.load %arg4[%c0_3, %c0_4] : memref<8x32xf32, #tpu.memory_space<vmem>>, vector<8x32xf32>
    %cst = arith.constant dense<0.000000e+00> : vector<16x16xf32>
    %3 = tpu.matmul %0, %0, %cst {dimension_numbers = #tpu.dot_dimension_numbers<[1], [1], [0], [0], [0, 0, 1, 0], [], []>} : vector<16x8xf32>, vector<16x8xf32>, vector<16x16xf32> -> vector<16x16xf32>
    %cst_5 = arith.constant 0.000000e+00 : f32
    %4 = vector.broadcast %cst_5 : f32 to vector<16x16xf32>
    %5 = arith.maximumf %3, %4 : vector<16x16xf32>
    %cst_6 = arith.constant dense<0xFF800000> : vector<16xf32>
    %6 = vector.multi_reduction <maximumf>, %5, %cst_6 [1] : vector<16x16xf32> to vector<16xf32>
    %7 = vector.shape_cast %6 : vector<16xf32> to vector<16x1xf32>
    %8 = vector.broadcast %7 : vector<16x1xf32> to vector<16x16xf32>
    %9 = arith.subf %5, %8 : vector<16x16xf32>
    %10 = math.exp %9 : vector<16x16xf32>
    %cst_7 = arith.constant dense<0.000000e+00> : vector<16xf32>
    %11 = vector.multi_reduction <add>, %10, %cst_7 [1] : vector<16x16xf32> to vector<16xf32>
    %12 = vector.shape_cast %11 : vector<16xf32> to vector<16x1xf32>
    %13 = tpu.reciprocal %12 {approx = true} : vector<16x1xf32> -> vector<16x1xf32>
    %14 = arith.mulf %12, %13 : vector<16x1xf32>
    %cst_8 = arith.constant 2.000000e+00 : f32
    %15 = vector.broadcast %cst_8 : f32 to vector<16x1xf32>
    %16 = arith.subf %15, %14 : vector<16x1xf32>
    %17 = arith.mulf %13, %16 : vector<16x1xf32>
    %18 = vector.broadcast %17 : vector<16x1xf32> to vector<16x16xf32>
    %19 = arith.mulf %10, %18 : vector<16x16xf32>
    %cst_9 = arith.constant dense<0.000000e+00> : vector<16x384xf32>
    %20 = tpu.matmul %0, %1, %cst_9 {dimension_numbers = #tpu.dot_dimension_numbers<[1], [0], [0], [1], [0, 0, 1, 1], [], []>} : vector<16x8xf32>, vector<8x384xf32>, vector<16x384xf32> -> vector<16x384xf32>
    %cst_10 = arith.constant dense<0.000000e+00> : vector<16x32xf32>
    %21 = tpu.matmul %0, %2, %cst_10 {dimension_numbers = #tpu.dot_dimension_numbers<[1], [0], [0], [1], [0, 0, 1, 1], [], []>} : vector<16x8xf32>, vector<8x32xf32>, vector<16x32xf32> -> vector<16x32xf32>
    %c0_11 = arith.constant 0 : index
    %c0_12 = arith.constant 0 : index
    %22 = vector.load %arg1[%c0_11, %c0_12] : memref<16x8xf32, #tpu.memory_space<vmem>>, vector<16x8xf32>
    %23 = vector.shape_cast %20 : vector<16x384xf32> to vector<16x12x32xf32>
    %24 = vector.shape_cast %22 : vector<16x8xf32> to vector<16x2x4xf32>
    %25 = vector.extract_strided_slice %23 {offsets = [0, 0, 0], sizes = [16, 4, 32], strides = [1, 1, 1]} : vector<16x12x32xf32> to vector<16x4x32xf32>
    "tpu.trace_start"() <{level = 10 : i32, message = "nbi,nio->nbo"}> : () -> ()
    %cst_13 = arith.constant dense<0.000000e+00> : vector<16x2x32xf32>
    %26 = tpu.matmul %24, %25, %cst_13 {dimension_numbers = #tpu.dot_dimension_numbers<[2], [1], [1], [2], [0, 0, 0, 1, 1, 2], [0], [0]>} : vector<16x2x4xf32>, vector<16x4x32xf32>, vector<16x2x32xf32> -> vector<16x2x32xf32>
    "tpu.trace_stop"() : () -> ()
    %cst_14 = arith.constant dense<0.000000e+00> : vector<16x8xf32>
    %27 = tpu.matmul %19, %22, %cst_14 {dimension_numbers = #tpu.dot_dimension_numbers<[1], [0], [0], [1], [0, 0, 1, 1], [], []>} : vector<16x16xf32>, vector<16x8xf32>, vector<16x8xf32> -> vector<16x8xf32>
    %28 = vector.shape_cast %27 : vector<16x8xf32> to vector<16x2x4xf32>
    %29 = vector.extract_strided_slice %23 {offsets = [0, 4, 0], sizes = [16, 4, 32], strides = [1, 1, 1]} : vector<16x12x32xf32> to vector<16x4x32xf32>
    "tpu.trace_start"() <{level = 10 : i32, message = "nbi,nio->nbo"}> : () -> ()
    %cst_15 = arith.constant dense<0.000000e+00> : vector<16x2x32xf32>
    %30 = tpu.matmul %28, %29, %cst_15 {dimension_numbers = #tpu.dot_dimension_numbers<[2], [1], [1], [2], [0, 0, 0, 1, 1, 2], [0], [0]>} : vector<16x2x4xf32>, vector<16x4x32xf32>, vector<16x2x32xf32> -> vector<16x2x32xf32>
    "tpu.trace_stop"() : () -> ()
    %31 = arith.addf %26, %30 : vector<16x2x32xf32>
    %cst_16 = arith.constant dense<0.000000e+00> : vector<16x8xf32>
    %32 = tpu.matmul %19, %27, %cst_16 {dimension_numbers = #tpu.dot_dimension_numbers<[1], [0], [0], [1], [0, 0, 1, 1], [], []>} : vector<16x16xf32>, vector<16x8xf32>, vector<16x8xf32> -> vector<16x8xf32>
    %cst_17 = arith.constant 2.000000e+00 : f32
    %33 = vector.broadcast %cst_17 : f32 to vector<16x8xf32>
    %34 = arith.mulf %33, %32 : vector<16x8xf32>
    %35 = arith.subf %34, %22 : vector<16x8xf32>
    %36 = vector.shape_cast %35 : vector<16x8xf32> to vector<16x2x4xf32>
    %37 = vector.extract_strided_slice %23 {offsets = [0, 8, 0], sizes = [16, 4, 32], strides = [1, 1, 1]} : vector<16x12x32xf32> to vector<16x4x32xf32>
    "tpu.trace_start"() <{level = 10 : i32, message = "nbi,nio->nbo"}> : () -> ()
    %cst_18 = arith.constant dense<0.000000e+00> : vector<16x2x32xf32>
    %38 = tpu.matmul %36, %37, %cst_18 {dimension_numbers = #tpu.dot_dimension_numbers<[2], [1], [1], [2], [0, 0, 0, 1, 1, 2], [0], [0]>} : vector<16x2x4xf32>, vector<16x4x32xf32>, vector<16x2x32xf32> -> vector<16x2x32xf32>
    "tpu.trace_stop"() : () -> ()
    %39 = arith.addf %31, %38 : vector<16x2x32xf32>
    %40 = vector.shape_cast %21 : vector<16x32xf32> to vector<16x1x32xf32>
    %41 = vector.broadcast %40 : vector<16x1x32xf32> to vector<16x2x32xf32>
    %42 = arith.addf %39, %41 : vector<16x2x32xf32>
    %43 = vector.shape_cast %42 : vector<16x2x32xf32> to vector<16x64xf32>
    %c0_19 = arith.constant 0 : index
    %c0_20 = arith.constant 0 : index
    %44 = vector.load %arg5[%c0_19, %c0_20] : memref<16x64xf32, #tpu.memory_space<vmem>>, vector<16x64xf32>
    tpu.vector_store %arg5[%c0_19, %c0_20], %43 {strides = array<i32>} : memref<16x64xf32, #tpu.memory_space<vmem>>, vector<16x64xf32>,
    return
  }
  func.func @transform_0(%arg0: i32) -> (i32, i32) {
    %c0_i32 = arith.constant 0 : i32
    %c0_i32_0 = arith.constant 0 : i32
    %c0_i32_1 = arith.constant 0 : i32
    return %c0_i32, %c0_i32_0 : i32, i32
  }
  func.func @transform_1(%arg0: i32) -> (i32, i32) {
    %c0_i32 = arith.constant 0 : i32
    %c0_i32_0 = arith.constant 0 : i32
    %c0_i32_1 = arith.constant 0 : i32
    return %c0_i32, %c0_i32_0 : i32, i32
  }
  func.func @transform_2(%arg0: i32) -> (i32, i32) {
    %c0_i32 = arith.constant 0 : i32
    %c0_i32_0 = arith.constant 0 : i32
    %c0_i32_1 = arith.constant 0 : i32
    return %c0_i32, %c0_i32_0 : i32, i32
  }
  func.func @transform_3(%arg0: i32) -> (i32, i32) {
    %c0_i32 = arith.constant 0 : i32
    %c0_i32_0 = arith.constant 0 : i32
    %c0_i32_1 = arith.constant 0 : i32
    return %c0_i32, %c0_i32_0 : i32, i32
  }
  func.func @transform_4(%arg0: i32) -> (i32, i32) {
    %c0_i32 = arith.constant 0 : i32
    %c0_i32_0 = arith.constant 0 : i32
    %c0_i32_1 = arith.constant 0 : i32
    return %c0_i32, %c0_i32_0 : i32, i32
  }
}

</mosaic_0001>

<bundles_post_ra>
// kernel: tpu_custom_call.1
= control target key start
LH: loop header
LB: loop body
LE: loop exit
PB: predicated region body
PF: predicated region fallthrough
CT: control target
= control target key end

     0   :  { %vm24_vm0 = vcmask 64512   ;;  %s6760_s0 = inlined_call_operand.vmem [shape: f32[16,8], index: 0, kind: input, shape index: {}]   ;;  %s6761_s1 = inlined_call_operand.vmem [shape: f32[16,8], index: 1, kind: input, shape index: {}]   ;;  %s6762_s2 = inlined_call_operand.vmem [shape: f32[8,384], index: 2, kind: input, shape index: {}]   ;;  %s6763_s3 = inlined_call_operand.vmem [shape: f32[8,32], index: 3, kind: input, shape index: {}]   ;;  %s6764_s4 = inlined_call_operand.hbm [shape: f32[16,64], index: 4, kind: output, shape index: {}]  }
   0x1   :  { %v18_v0 = vld [vmem:[%s6761_s1] sm:$0xff]  ;;  %v6002_v1 = vld [vmem:[%s6761_s1 + $0x8] sm:$0xff] }
   0x2   :  { %9 = vsyncpa [#allocation3], 0  ;;  %v5901_v2 = vpack.c.bf16 %v6002_v1, %v18_v0  ;;  %5634 = vmatprep.mubr.msk.f32.mxu0 %vm24_vm0, %v18_v0  ;;  %vm108_vm2 = vcmask 130048   ;;  %v21_v9 = vld [vmem:[%s6762_s2 + $0x8] sm:$0xff]  ;;  %v20_v10 = vld [vmem:[%s6762_s2] sm:$0xff]  ;;  %v5959_v11 = vmov 0.0   ;;  %v431_v45 = vlaneseq }
   0x3   :  { %vm5902_vm1 = vmpackc.low %vm24_vm0, %vm24_vm0  ;;  %137 = vmatprep.subr.mxu1 %v21_v9  ;;  %201 = vmatprep.mubr.f32.mxu1 %v5959_v11  ;;  %v22_v22 = vld [vmem:[%s6762_s2 + $0x10] sm:$0xff]  ;;  %v6033_v23 = vld [vmem:[%s6760_s0] sm:$0xff]  ;;  %s5960_s2 = smov 64   ;;  %s5961_s28 = smov 96   ;;  %v5963_v43 = vmov 1983009808  }
   0x4   :  { %5903 = vmatprep.subr.msk.bf16.mxu0 %vm5902_vm1, %v5901_v2  ;;  %138 = vmatpush1.msra.mxu1 %v20_v10  ;;  %v6038_v24 = vld [vmem:[%s6760_s0 + $0x8] sm:$0xff]  ;;  %s5962_s0 = smov 32   ;;  %v23_v30 = vld [vmem:[%s6763_s3] sm:$0xff]  ;;  %v429_v44 = vunpack.c.l.s4 %v5963_v43  ;;  %v6080_v47 = vshrl.u32 %v431_v45, 7  ;;  %v5964_v54 = vmov 1934713408  }
   0x5   :  { %5906 = vmatpush3.bf16.xpose.msk.msra.mxu0 %vm5902_vm1, %v5901_v2  ;;  %5410 = vmatmul.mubr.msk.f32.vlgmr.msra.gmra.mrb[0].mxu1 %vm24_vm0, %v18_v0  ;;  %v5907_v25 = vpack.c.bf16 %v6038_v24, %v6033_v23  ;;  %v493_v55 = vunpack.c.l.s4 %v5964_v54  ;;  %vm1201_vm3 = vcmask 1043456   ;;  %vm5965_vm4 = vmmov 0   ;;  %s5966_s3 = smov 124   ;;  %s5968_s5 = smov [#allocation2]  }
   0x6   :  { %207 = vmatprep.mubr.f32.mxu1 %v5959_v11  ;;  %5637 = vmatprep.subr.mxu1 %v22_v22  ;;  %v430_v46 = vunpack.c.0.s8 %v429_v44  ;;  %vm1197_vm5 = vcmask 31744   ;;  %vm5384_vm6 = vcmask 261120   ;;  %vm5387_vm7 = vcmask 523264   ;;  %s5395_s6 = sshll.u32 %s5968_s5, 4  ;;  %s5396_s6 = int_to_ptr.vmem [resolvable:$true] %s5395_s6 }
   0x7   :  { %5638 = vmatpush3.msra.mxu1 %v22_v22  ;;  %5642 = vmatprep.subr.mxu0 %v23_v30  ;;  %s5935_s7 = scalar_lea.vmem %s5396_s6, 256  ;;  %p5940_p1 = scmp.lt.s32.totalorder %s5396_s6, %s5396_s6 }
   0x8   :  { %5908 = vmatprep.subr.bf16.mxu1 %v5907_v25  ;;  %v6083_v50 = vsub.s32 %v430_v46, %v6080_v47  ;;  %p5936_p0 = scmp.ne.s32.totalorder %s5396_s6, %s5935_s7  ;;  %p5941_p2 = scmp.lt.s32.totalorder %s5935_s7, %s5935_s7 }
   0x9   :  { %5411 = vmatmul.mubr.msk.f32.gmra.mrb[2].mxu1 %vm24_vm0, %v6002_v1 }
   0xa   :  { %5639 = vmatprep.mubr.msk.f32.mxu1 %vm24_vm0, %v18_v0  ;;  %p5942_p3 = por %p5941_p2, %p5940_p1 }
   0xc   :  { %5635 = vmatmul.mubr.msk.f32.vlgmr.msra.gmra.mrb[0].mxu0 %vm24_vm0, %v6002_v1  ;;  %p5943_p4 = pnand %p5942_p3, %p5936_p0 }
   0xd   :  { %5644 = vmatprep.mubr.msk.f32.mxu0 %vm24_vm0, %v18_v0  ;;  %5640 = vmatmul.mubr.msk.f32.vlgmr.msra.gmra.mrb[4].mxu1 %vm24_vm0, %v6002_v1  ;;  %v494_v0 = vunpack.c.0.s8 %v493_v55 }
   0xe   :  { %5910 = vmatpush3.bf16.msra.mxu1 %v5907_v25  ;;  %5643 = vmatpush3.msra.mxu0 %v23_v30 }
   0xf   :  { %5659 = vmatprep.subr.mxu1 %v5959_v11  ;;  %5654 = vmatprep.subr.mxu0 %v5959_v11 }
  0x10   :  { %5645 = vmatmul.mubr.msk.f32.vlgmr.msra.gmra.mrb[2].mxu0 %vm24_vm0, %v6002_v1 }
  0x11   :  { %5656 = vmatprep.mubr.msk.f32.mxu0 %vm5965_vm4, %v5959_v11 }
  0xd8   :  { %v203_v26 = vpop.f32.mrb[0].mxu1 }
  0xd9   :  { %v6046_v27 = vpop.f32.mrb[1].mxu1 }
  0xdc   :  { %v6049_v28 = vpop.f32.mrb[2].mxu1 }
  0xdd   :  { %v6054_v29 = vpop.f32.mrb[3].mxu1 }
  0xdf   :  { %v5636_v3 = vpop.f32.mrb[0].mxu0 }
  0xe0   :  { %v97_v4 = vpop.f32.mrb[1].mxu0  ;;  %v107_v6 = vmax.f32 %v5636_v3, 0.0  ;;  %v6128_v44 = vpop.f32.mrb[4].mxu1 }
  0xe1   :  { %v106_v5 = vmax.f32 %v97_v4, 0.0  ;;  %v6130_v45 = vpop.f32.mrb[5].mxu1 }
  0xe2   :  { %v112_v8 = vsel %vm108_vm2, %v107_v6, -inf }
  0xe3   :  { %v109_v7 = vsel %vm108_vm2, %v106_v5, -inf }
  0xe4   :  { %110 = vmax.xlane.f32.xlu0 %v109_v7  ;;  %v6092_v7 = vsub.s32 %v494_v0, %v6080_v47 }
  0xe8   :  { %113 = vmax.xlane.f32.xlu0 %v112_v8 }
  0xfe   :  { %368 = vrot.lane.b32.xlu0 %v203_v26, %s5961_s28 }
 0x102   :  { %394 = vrot.lane.b32.xlu0 %v6046_v27, %s5960_s2 }
 0x171   :  { %v111_v12 = vpop.xlane.xlu0 %110 }
 0x172   :  { %v115_v13 = vsub.f32 %v106_v5, %v111_v12 }
 0x174   :  { %v117_v14 = vmul.f32 1.442695, %v115_v13 }
 0x175   :  { %v114_v15 = vpop.xlane.xlu0 %113 }
 0x176   :  { %5927 = vpow2.f32 %v117_v14  ;;  %v116_v16 = vsub.f32 %v107_v6, %v114_v15 }
 0x178   :  { %v119_v17 = vmul.f32 1.442695, %v116_v16 }
 0x179   :  { %v369_v49 = vpop.permute.xlu0 %368 }
 0x17a   :  { %5929 = vpow2.f32 %v119_v17 }
 0x17d   :  { %v395_v60 = vpop.permute.xlu0 %394 }
 0x17e   :  { %v458_v1 = vcombine.low %v6046_v27, %v395_v60  ;;  %v459_v5 = vcombine.high %v6046_v27, %v395_v60 }
 0x180   :  { %v5928_v18 = vpop.eup %5927  ;;  %v466_v12 = vrot.slane %v458_v1, %v6083_v50  ;;  %v473_v13 = vrot.slane %v459_v5, %v6083_v50 }
 0x181   :  { %v121_v19 = vsel %vm108_vm2, %v5928_v18, 0.0 }
 0x182   :  { %122 = vadd.xlane.f32.xlu1 %v121_v19 }
 0x184   :  { %v5930_v20 = vpop.eup %5929 }
 0x185   :  { %v124_v21 = vsel %vm108_vm2, %v5930_v20, 0.0 }
 0x186   :  { %125 = vadd.xlane.f32.xlu1 %v124_v21 }
 0x197   :  { %374 = vrot.lane.b32.xlu1 %v203_v26, %s5960_s2 }
 0x19b   :  { %380 = vrot.lane.b32.xlu1 %v203_v26, %s5962_s0 }
 0x19f   :  { %388 = vrot.lane.b32.xlu1 %v6046_v27, %s5961_s28 }
 0x1a3   :  { %400 = vrot.lane.b32.xlu1 %v6046_v27, %s5962_s0 }
 0x1a7   :  { %370 = vrot.lane.b32.xlu1 %v6049_v28, %s5961_s28 }
 0x1ab   :  { %382 = vrot.lane.b32.xlu1 %v6049_v28, %s5962_s0 }
 0x1af   :  { %396 = vrot.lane.b32.xlu1 %v6054_v29, %s5960_s2 }
 0x20f   :  { %v123_v31 = vpop.xlane.xlu1 %122 }
 0x210   :  { %5931 = vrcp.f32 %v123_v31 }
 0x213   :  { %v126_v32 = vpop.xlane.xlu1 %125 }
 0x214   :  { %5933 = vrcp.f32 %v126_v32 }
 0x217   :  { %v375_v48 = vpop.permute.xlu1 %374 }
 0x218   :  { %v426_v51 = vcombine.low %v203_v26, %v375_v48  ;;  %v427_v52 = vcombine.high %v203_v26, %v375_v48 }
 0x21a   :  { %v5932_v33 = vpop.eup %5931  ;;  %v434_v56 = vrot.slane %v426_v51, %v6083_v50  ;;  %v441_v57 = vrot.slane %v427_v52, %v6083_v50  ;;  %v6164_v51 = vpop.f32.mrb[2].mxu0 }
 0x21b   :  { %v129_v34 = vmul.f32 %v5932_v33, %v123_v31  ;;  %v381_v53 = vpop.permute.xlu1 %380  ;;  %v6166_v52 = vpop.f32.mrb[3].mxu0 }
 0x21c   :  { %v442_v58 = vcombine.low %v369_v49, %v381_v53  ;;  %v443_v59 = vcombine.high %v369_v49, %v381_v53 }
 0x21d   :  { %v131_v35 = vsub.f32 2.0, %v129_v34 }
 0x21e   :  { %v5934_v36 = vpop.eup %5933  ;;  %v450_v61 = vrot.slane %v442_v58, %v6083_v50  ;;  %v457_v62 = vrot.slane %v443_v59, %v6083_v50 }
 0x21f   :  { %v133_v37 = vmul.f32 %v5932_v33, %v131_v35  ;;  %v130_v38 = vmul.f32 %v5934_v36, %v126_v32  ;;  %v389_v63 = vpop.permute.xlu1 %388 }
 0x220   :  { %v491_v2 = vcombine.high %v434_v56, %v450_v61  ;;  %v506_v3 = vcombine.low %v441_v57, %v457_v62  ;;  %v507_v4 = vcombine.high %v441_v57, %v457_v62  ;;  %v490_v8 = vcombine.low %v434_v56, %v450_v61 }
 0x221   :  { %v6072_v39 = vmul.f32 %v5928_v18, %v133_v37  ;;  %v132_v40 = vsub.f32 2.0, %v130_v38 }
 0x222   :  { %v498_v16 = vrot.slane %v490_v8, %v6092_v7  ;;  %v505_v17 = vrot.slane %v491_v2, %v6092_v7  ;;  %v514_v22 = vrot.slane %v506_v3, %v6092_v7  ;;  %v521_v25 = vrot.slane %v507_v4, %v6092_v7 }
 0x223   :  { %v134_v41 = vmul.f32 %v5934_v36, %v132_v40  ;;  %5651 = vmatprep.mubr.msk.f32.mxu1 %vm108_vm2, %v6072_v39  ;;  %v401_v6 = vpop.permute.xlu1 %400 }
 0x224   :  { %v474_v9 = vcombine.low %v389_v63, %v401_v6  ;;  %v475_v10 = vcombine.high %v389_v63, %v401_v6 }
 0x225   :  { %v6076_v42 = vmul.f32 %v5930_v20, %v134_v41 }
 0x226   :  { %v482_v14 = vrot.slane %v474_v9, %v6083_v50  ;;  %v489_v15 = vrot.slane %v475_v10, %v6083_v50 }
 0x227   :  { %5652 = vmatmul.mubr.msk.f32.vlgmr.msra.gmra.mrb[6].mxu1 %vm108_vm2, %v6076_v42  ;;  %v371_v53 = vpop.permute.xlu1 %370 }
 0x228   :  { %v522_v18 = vcombine.low %v466_v12, %v482_v14  ;;  %v523_v19 = vcombine.high %v466_v12, %v482_v14  ;;  %v538_v20 = vcombine.low %v473_v13, %v489_v15  ;;  %v539_v21 = vcombine.high %v473_v13, %v489_v15  ;;  %5661 = vmatprep.mubr.msk.f32.mxu1 %vm5965_vm4, %v5959_v11 }
 0x22a   :  { %v530_v26 = vrot.slane %v522_v18, %v6092_v7  ;;  %v537_v27 = vrot.slane %v523_v19, %v6092_v7  ;;  %v546_v30 = vrot.slane %v538_v20, %v6092_v7  ;;  %v553_v31 = vrot.slane %v539_v21, %v6092_v7 }
 0x22b   :  { %v383_v54 = vpop.permute.xlu1 %382 }
 0x22c   :  { %v6106_v32 = vcombine.low %v498_v16, %v530_v26  ;;  %v6108_v33 = vcombine.high %v498_v16, %v530_v26  ;;  %v6110_v34 = vcombine.low %v505_v17, %v537_v27  ;;  %v6112_v35 = vcombine.high %v505_v17, %v537_v27 }
 0x22d   :  { %v6114_v36 = vcombine.low %v514_v22, %v546_v30  ;;  %v6116_v37 = vcombine.high %v514_v22, %v546_v30  ;;  %v6118_v38 = vcombine.low %v521_v25, %v553_v31  ;;  %v6120_v40 = vcombine.high %v521_v25, %v553_v31 }
 0x22e   :  { %v1196_v41 = vrot.slane %v6106_v32, 4  ;;  %v1275_v43 = vrot.slane %v6108_v33, 4  ;;  %v1352_v0 = vrot.slane %v6110_v34, 4  ;;  %v1429_v4 = vrot.slane %v6112_v35, 4 }
 0x22f   :  { %v397_v62 = vpop.permute.xlu1 %396  ;;  %v646_v9 = vcombine.low %v371_v53, %v383_v54  ;;  %v1506_v14 = vrot.slane %v6114_v36, 4  ;;  %v647_v15 = vcombine.high %v371_v53, %v383_v54  ;;  %v1583_v20 = vrot.slane %v6116_v37, 4 }
 0x230   :  { %5655 = vmatpush3.msk.msra.mxu0 %vm1201_vm3, %v1196_v41  ;;  %5660 = vmatpush3.msk.msra.mxu1 %vm1201_vm3, %v1275_v43  ;;  %v662_v16 = vcombine.low %v6054_v29, %v397_v62  ;;  %v663_v17 = vcombine.high %v6054_v29, %v397_v62  ;;  %v1737_v62 = vrot.slane %v6120_v40, 4 }
 0x231   :  { %5664 = vmatprep.subr.mxu0 %v5959_v11  ;;  %5669 = vmatprep.subr.mxu1 %v5959_v11  ;;  %v654_v22 = vrot.slane %v646_v9, %v6083_v50 }
 0x232   :  { %v670_v27 = vrot.slane %v662_v16, %v6083_v50  ;;  %v677_v30 = vrot.slane %v663_v17, %v6083_v50 }
 0x2fa   :  { %v6136_v46 = vpop.f32.mrb[6].mxu1 }
 0x2fb   :  { %1059 = vrot.lane.b32.xlu1 %v6136_v46, %s5966_s3  ;;  %v1046_v48 = vpop.f32.mrb[7].mxu1  ;;  %v6209_v43 = vcombine.high %v6136_v46, %v5959_v11 }
 0x2fc   :  { %1057 = vrot.lane.b32.xlu0 %v1046_v48, %s5966_s3  ;;  %v6142_v49 = vpack.c.bf16 %v6136_v46, %v1046_v48  ;;  %v1070_v56 = vrot.slane %v1046_v48, %v6083_v50  ;;  %v1063_v60 = vcombine.high %v1046_v48, %v5959_v11  ;;  %v6213_v48 = vrot.slane %v6136_v46, %v6083_v50 }
 0x2fe   :  { %v1077_v5 = vrot.slane %v1063_v60, %v6083_v50 }
 0x2ff   :  { %838 = vrot.lane.b32.xlu1 %v6038_v24, %s5966_s3 }
 0x300   :  { %376 = vrot.lane.b32.xlu0 %v6049_v28, %s5960_s2 }
 0x303   :  { %414 = vrot.lane.b32.xlu1 %v6130_v45, %s5960_s2 }
 0x304   :  { %390 = vrot.lane.b32.xlu0 %v6054_v29, %s5961_s28 }
 0x308   :  { %402 = vrot.lane.b32.xlu0 %v6054_v29, %s5962_s0 }
 0x30c   :  { %836 = vrot.lane.b32.xlu0 %v6033_v23, %s5966_s3 }
 0x310   :  { %408 = vrot.lane.b32.xlu0 %v6130_v45, %s5961_s28 }
 0x314   :  { %420 = vrot.lane.b32.xlu0 %v6130_v45, %s5962_s0 }
 0x318   :  { %410 = vrot.lane.b32.xlu0 %v6128_v44, %s5961_s28 }
 0x31c   :  { %422 = vrot.lane.b32.xlu0 %v6128_v44, %s5962_s0 }
 0x36d   :  { %v1060_v8 = vpop.permute.xlu1 %1059 }
 0x36e   :  { %v1058_v55 = vpop.permute.xlu0 %1057  ;;  %v1144_v31 = vcombine.high %v1060_v8, %v5959_v11  ;;  %v6216_v53 = vrot.slane %v1060_v8, %v6083_v50 }
 0x36f   :  { %v1085_v57 = vrot.slane %v1058_v55, %v6083_v50  ;;  %v1078_v58 = vcombine.high %v1058_v55, %v5959_v11 }
 0x371   :  { %v1093_v59 = vcombine.low %v1070_v56, %v1085_v57  ;;  %v1092_v1 = vrot.slane %v1078_v58, %v6083_v50  ;;  %v1094_v2 = vcombine.high %v1070_v56, %v1085_v57  ;;  %v6204_v41 = vpop.permute.xlu1 %838  ;;  %v1660_v56 = vrot.slane %v6118_v38, 4 }
 0x372   :  { %v377_v61 = vpop.permute.xlu0 %376 }
 0x373   :  { %v1101_v63 = vrot.slane %v1093_v59, %v6092_v7  ;;  %v1108_v10 = vrot.slane %v1094_v2, %v6092_v7  ;;  %v1109_v12 = vcombine.low %v1077_v5, %v1092_v1  ;;  %v630_v13 = vcombine.low %v6049_v28, %v377_v61 }
 0x374   :  { %v631_v18 = vcombine.high %v6049_v28, %v377_v61  ;;  %v1110_v21 = vcombine.high %v1077_v5, %v1092_v1  ;;  %v661_v28 = vrot.slane %v647_v15, %v6083_v50  ;;  %v1159_v2 = vcombine.low %v6213_v48, %v6216_v53 }
 0x375   :  { %v1125_v3 = vcombine.high %v1101_v63, %v5959_v11  ;;  %5657 = vmatmul.mubr.msk.f32.vlgmr.msra.gmra.mrb[4].mxu0 %vm1197_vm5, %v1101_v63  ;;  %v1117_v25 = vrot.slane %v1109_v12, %v6092_v7  ;;  %v1126_v29 = vcombine.high %v1108_v10, %v5959_v11  ;;  %v638_v26 = vrot.slane %v630_v13, %v6083_v50 }
 0x376   :  { %5665 = vmatpush3.msk.msra.mxu0 %vm1201_vm3, %v1352_v0  ;;  %v391_v6 = vpop.permute.xlu0 %390  ;;  %5666 = vmatprep.mubr.msk.f32.mxu0 %vm5965_vm4, %v5959_v11  ;;  %v645_v54 = vrot.slane %v631_v18, %v6083_v50  ;;  %v1124_v57 = vrot.slane %v1110_v21, %v6092_v7  ;;  %v6232_v63 = vrot.slane %v1144_v31, %v6083_v50 }
 0x377   :  { %5662 = vmatmul.mubr.msk.f32.vlgmr.msra.gmra.mrb[8].mxu1 %vm1197_vm5, %v1125_v3  ;;  %5674 = vmatprep.subr.mxu0 %v5959_v11  ;;  %v1127_v46 = vcombine.high %v1117_v25, %v5959_v11  ;;  %v694_v60 = vcombine.low %v638_v26, %v654_v22  ;;  %v695_v61 = vcombine.high %v638_v26, %v654_v22 }
 0x378   :  { %5670 = vmatpush3.msk.msra.mxu1 %vm1201_vm3, %v1429_v4  ;;  %5671 = vmatprep.mubr.msk.f32.mxu1 %vm5965_vm4, %v5959_v11  ;;  %v710_v3 = vcombine.low %v645_v54, %v661_v28  ;;  %v711_v4 = vcombine.high %v645_v54, %v661_v28  ;;  %v1160_v13 = vcombine.high %v6213_v48, %v6216_v53 }
 0x379   :  { %5667 = vmatmul.mubr.msk.f32.vlgmr.msra.gmra.mrb[6].mxu0 %vm1197_vm5, %v1108_v10  ;;  %5679 = vmatprep.subr.mxu1 %v5959_v11  ;;  %v702_v15 = vrot.slane %v694_v60, %v6092_v7  ;;  %v709_v16 = vrot.slane %v695_v61, %v6092_v7  ;;  %v1167_v21 = vrot.slane %v1159_v2, %v6092_v7 }
 0x37a   :  { %v403_v19 = vpop.permute.xlu0 %402  ;;  %5675 = vmatpush3.msk.msra.mxu0 %vm1201_vm3, %v1506_v14  ;;  %5676 = vmatprep.mubr.msk.f32.mxu0 %vm5965_vm4, %v5959_v11  ;;  %v1128_v14 = vcombine.high %v1124_v57, %v5959_v11  ;;  %v718_v22 = vrot.slane %v710_v3, %v6092_v7 }
 0x37b   :  { %5672 = vmatmul.mubr.msk.f32.vlgmr.msra.gmra.mrb[10].mxu1 %vm1197_vm5, %v1126_v29  ;;  %v678_v58 = vcombine.low %v391_v6, %v403_v19  ;;  %v679_v59 = vcombine.high %v391_v6, %v403_v19  ;;  %5684 = vmatprep.subr.mxu0 %v5959_v11  ;;  %v415_v6 = vpop.permute.xlu1 %414  ;;  %v1191_v60 = vcombine.high %v1167_v21, %v5959_v11 }
 0x37c   :  { %5680 = vmatpush3.msk.msra.mxu1 %vm1201_vm3, %v1583_v20  ;;  %5681 = vmatprep.mubr.msk.f32.mxu1 %vm5965_vm4, %v5959_v11  ;;  %v562_v29 = vcombine.low %v6130_v45, %v415_v6 }
 0x37d   :  { %5677 = vmatmul.mubr.msk.f32.vlgmr.msra.gmra.mrb[8].mxu0 %vm1197_vm5, %v1117_v25  ;;  %v686_v0 = vrot.slane %v678_v58, %v6083_v50  ;;  %v693_v1 = vrot.slane %v679_v59, %v6083_v50  ;;  %5689 = vmatprep.subr.mxu1 %v5959_v11  ;;  %v725_v25 = vrot.slane %v711_v4, %v6092_v7 }
 0x37e   :  { %v6220_v55 = vpop.permute.xlu0 %836  ;;  %5685 = vmatpush3.msk.msra.mxu0 %vm1201_vm3, %v1660_v56  ;;  %5686 = vmatprep.mubr.msk.f32.mxu0 %vm5965_vm4, %v5959_v11 }
 0x37f   :  { %5682 = vmatmul.mubr.msk.f32.vlgmr.msra.gmra.mrb[12].mxu1 %vm1197_vm5, %v1127_v46  ;;  %v726_v8 = vcombine.low %v670_v27, %v686_v0  ;;  %v727_v9 = vcombine.high %v670_v27, %v686_v0  ;;  %v742_v10 = vcombine.low %v677_v30, %v693_v1  ;;  %v743_v12 = vcombine.high %v677_v30, %v693_v1 }
 0x380   :  { %5690 = vmatpush3.msk.msra.mxu1 %vm1201_vm3, %v1737_v62  ;;  %5691 = vmatprep.mubr.msk.f32.mxu1 %vm5965_vm4, %v5959_v11  ;;  %v1143_v46 = vrot.slane %v6209_v43, %v6083_v50  ;;  %v6295_v1 = vrot.slane %v562_v29, %v6083_v50 }
 0x381   :  { %v734_v17 = vrot.slane %v726_v8, %v6092_v7  ;;  %v741_v18 = vrot.slane %v727_v9, %v6092_v7  ;;  %v750_v19 = vrot.slane %v742_v10, %v6092_v7  ;;  %v757_v20 = vrot.slane %v743_v12, %v6092_v7  ;;  %5687 = vmatmul.mubr.msk.f32.vlgmr.msra.gmra.mrb[10].mxu0 %vm1197_vm5, %v1124_v57 }
 0x382   :  { %v409_v5 = vpop.permute.xlu0 %408  ;;  %5694 = vmatprep.subr.mxu0 %v5959_v11  ;;  %v563_v57 = vcombine.high %v6130_v45, %v415_v6  ;;  %5699 = vmatprep.subr.mxu1 %v5959_v11  ;;  %v1174_v45 = vrot.slane %v1160_v13, %v6092_v7  ;;  %v1175_v0 = vcombine.low %v1143_v46, %v6232_v63 }
 0x383   :  { %v6262_v26 = vcombine.low %v702_v15, %v734_v17  ;;  %v6264_v28 = vcombine.high %v702_v15, %v734_v17  ;;  %v6266_v27 = vcombine.low %v709_v16, %v741_v18  ;;  %v6268_v30 = vcombine.high %v709_v16, %v741_v18  ;;  %5692 = vmatmul.mubr.msk.f32.vlgmr.msra.gmra.mrb[14].mxu1 %vm1197_vm5, %v1128_v14 }
 0x384   :  { %v6271_v31 = vcombine.low %v718_v22, %v750_v19  ;;  %v6273_v48 = vcombine.high %v718_v22, %v750_v19  ;;  %v6275_v53 = vcombine.low %v725_v25, %v757_v20  ;;  %v6277_v54 = vcombine.high %v725_v25, %v757_v20  ;;  %5696 = vmatprep.mubr.msk.f32.mxu0 %vm5965_vm4, %v5959_v11 }
 0x385   :  { %v1814_v58 = vrot.slane %v6262_v26, 4  ;;  %v1891_v59 = vrot.slane %v6264_v28, 4  ;;  %5701 = vmatprep.mubr.msk.f32.mxu1 %vm5965_vm4, %v5959_v11  ;;  %v1968_v2 = vrot.slane %v6266_v27, 4  ;;  %v6301_v43 = vrot.slane %v563_v57, %v6083_v50 }
 0x386   :  { %v421_v56 = vpop.permute.xlu0 %420  ;;  %v2045_v3 = vrot.slane %v6268_v30, 4  ;;  %v849_v6 = vrot.slane %v6033_v23, %v6083_v50  ;;  %v864_v8 = vrot.slane %v6220_v55, %v6083_v50  ;;  %v1176_v13 = vcombine.high %v1143_v46, %v6232_v63 }
 0x387   :  { %v578_v61 = vcombine.low %v409_v5, %v421_v56  ;;  %v579_v62 = vcombine.high %v409_v5, %v421_v56  ;;  %5695 = vmatpush3.msk.msra.mxu0 %vm1201_vm3, %v1814_v58  ;;  %5700 = vmatpush3.msk.msra.mxu1 %vm1201_vm3, %v1891_v59  ;;  %v1183_v14 = vrot.slane %v1175_v0, %v6092_v7  ;;  %v2122_v16 = vrot.slane %v6271_v31, 4 }
 0x388   :  { %5697 = vmatmul.mubr.msk.f32.vlgmr.msra.gmra.mrb[12].mxu0 %vm1197_vm5, %v1167_v21  ;;  %5702 = vmatmul.mubr.msk.f32.vlgmr.msra.gmra.mrb[16].mxu1 %vm1197_vm5, %v1191_v60  ;;  %v1192_v15 = vcombine.high %v1174_v45, %v5959_v11  ;;  %v2199_v17 = vrot.slane %v6273_v48, 4  ;;  %v872_v18 = vcombine.low %v849_v6, %v864_v8  ;;  %v842_v63 = vcombine.high %v6033_v23, %v5959_v11 }
 0x389   :  { %v6305_v4 = vrot.slane %v578_v61, %v6083_v50  ;;  %v6308_v5 = vrot.slane %v579_v62, %v6083_v50  ;;  %5704 = vmatprep.subr.mxu0 %v5959_v11  ;;  %5709 = vmatprep.subr.mxu1 %v5959_v11  ;;  %v1190_v19 = vrot.slane %v1176_v13, %v6092_v7  ;;  %v2276_v22 = vrot.slane %v6275_v53, 4 }
 0x38a   :  { %5705 = vmatpush3.msk.msra.mxu0 %vm1201_vm3, %v1968_v2  ;;  %5710 = vmatpush3.msk.msra.mxu1 %vm1201_vm3, %v2045_v3  ;;  %v1193_v20 = vcombine.high %v1183_v14, %v5959_v11  ;;  %v857_v21 = vcombine.high %v6220_v55, %v5959_v11  ;;  %v2353_v25 = vrot.slane %v6277_v54, 4  ;;  %v880_v29 = vrot.slane %v872_v18, %v6092_v7 }
 0x38b   :  { %v595_v9 = vcombine.high %v6295_v1, %v6305_v4  ;;  %v610_v10 = vcombine.low %v6301_v43, %v6308_v5  ;;  %v611_v12 = vcombine.high %v6301_v43, %v6308_v5  ;;  %5706 = vmatprep.mubr.msk.f32.mxu0 %vm5965_vm4, %v5959_v11  ;;  %5711 = vmatprep.mubr.msk.f32.mxu1 %vm5965_vm4, %v5959_v11 }
 0x38c   :  { %5714 = vmatprep.subr.mxu0 %v5959_v11  ;;  %5719 = vmatprep.subr.mxu1 %v5959_v11  ;;  %v856_v55 = vrot.slane %v842_v63, %v6083_v50  ;;  %v1194_v56 = vcombine.high %v1190_v19, %v5959_v11  ;;  %v871_v57 = vrot.slane %v857_v21, %v6083_v50 }
 0x38d   :  { %5707 = vmatmul.mubr.msk.f32.vlgmr.msra.gmra.mrb[14].mxu0 %vm1197_vm5, %v1174_v45  ;;  %5712 = vmatmul.mubr.msk.f32.vlgmr.msra.gmra.mrb[18].mxu1 %vm1197_vm5, %v1192_v15  ;;  %v873_v58 = vcombine.high %v849_v6, %v864_v8  ;;  %v904_v59 = vcombine.high %v880_v29, %v5959_v11  ;;  %v915_v61 = vrot.slane %v6038_v24, %v6083_v50 }
 0x38e   :  { %5715 = vmatpush3.msk.msra.mxu0 %vm1201_vm3, %v2122_v16  ;;  %5720 = vmatpush3.msk.msra.mxu1 %vm1201_vm3, %v2199_v17  ;;  %v888_v60 = vcombine.low %v856_v55, %v871_v57  ;;  %v594_v15 = vcombine.low %v6295_v1, %v6305_v4 }
 0x38f   :  { %5716 = vmatprep.mubr.msk.f32.mxu0 %vm5965_vm4, %v5959_v11  ;;  %5721 = vmatprep.mubr.msk.f32.mxu1 %vm5965_vm4, %v5959_v11  ;;  %v887_v46 = vrot.slane %v873_v58, %v6092_v7 }
 0x390   :  { %5724 = vmatprep.subr.mxu0 %v5959_v11  ;;  %5729 = vmatprep.subr.mxu1 %v5959_v11  ;;  %v896_v62 = vrot.slane %v888_v60, %v6092_v7 }
 0x391   :  { %5717 = vmatmul.mubr.msk.f32.vlgmr.msra.gmra.mrb[16].mxu0 %vm1197_vm5, %v1183_v14  ;;  %5722 = vmatmul.mubr.msk.f32.vlgmr.msra.gmra.mrb[20].mxu1 %vm1197_vm5, %v1193_v20  ;;  %v905_v45 = vcombine.high %v887_v46, %v5959_v11 }
 0x392   :  { %5725 = vmatpush3.msk.msra.mxu0 %vm1201_vm3, %v2276_v22  ;;  %5730 = vmatpush3.msk.msra.mxu1 %vm1201_vm3, %v2353_v25  ;;  %v906_v3 = vcombine.high %v896_v62, %v5959_v11 }
 0x393   :  { %5726 = vmatprep.mubr.msk.f32.mxu0 %vm5965_vm4, %v5959_v11  ;;  %5731 = vmatprep.mubr.msk.f32.mxu1 %vm5965_vm4, %v5959_v11 }
 0x394   :  { %5734 = vmatprep.subr.mxu0 %v5959_v11  ;;  %5739 = vmatprep.subr.mxu1 %v5959_v11 }
 0x395   :  { %5727 = vmatmul.mubr.msk.f32.vlgmr.msra.gmra.mrb[18].mxu0 %vm1197_vm5, %v1190_v19  ;;  %5732 = vmatmul.mubr.msk.f32.vlgmr.msra.gmra.mrb[22].mxu1 %vm1197_vm5, %v1194_v56 }
 0x396   :  { %5735 = vmatpush3.msk.msra.mxu0 %vm1201_vm3, %v6106_v32  ;;  %5740 = vmatpush3.msk.msra.mxu1 %vm1201_vm3, %v6108_v33  ;;  %v930_v32 = vrot.slane %v6204_v41, %v6083_v50  ;;  %v889_v33 = vcombine.high %v856_v55, %v871_v57 }
 0x397   :  { %5736 = vmatprep.mubr.msk.f32.mxu0 %vm5965_vm4, %v5959_v11  ;;  %5741 = vmatprep.mubr.msk.f32.mxu1 %vm5965_vm4, %v5959_v11 }
 0x398   :  { %5744 = vmatprep.subr.mxu0 %v5959_v11  ;;  %5749 = vmatprep.subr.mxu1 %v5959_v11  ;;  %v938_v0 = vcombine.low %v915_v61, %v930_v32  ;;  %v903_v2 = vrot.slane %v889_v33, %v6092_v7  ;;  %v939_v6 = vcombine.high %v915_v61, %v930_v32 }
 0x399   :  { %5737 = vmatmul.mubr.msk.f32.vlgmr.msra.gmra.mrb[20].mxu0 %vm1197_vm5, %v880_v29  ;;  %5742 = vmatmul.mubr.msk.f32.vlgmr.msra.gmra.mrb[24].mxu1 %vm1197_vm5, %v904_v59 }
 0x39a   :  { %5745 = vmatpush3.msk.msra.mxu0 %vm1201_vm3, %v6110_v34  ;;  %5750 = vmatpush3.msk.msra.mxu1 %vm1201_vm3, %v6112_v35  ;;  %v908_v34 = vcombine.high %v6038_v24, %v5959_v11  ;;  %v923_v35 = vcombine.high %v6204_v41, %v5959_v11  ;;  %v907_v8 = vcombine.high %v903_v2, %v5959_v11 }
 0x39b   :  { %5746 = vmatprep.mubr.msk.f32.mxu0 %vm5965_vm4, %v5959_v11  ;;  %5751 = vmatprep.mubr.msk.f32.mxu1 %vm5965_vm4, %v5959_v11 }
 0x39c   :  { %5754 = vmatprep.subr.mxu0 %v5959_v11  ;;  %5759 = vmatprep.subr.mxu1 %v5959_v11  ;;  %v937_v41 = vrot.slane %v923_v35, %v6083_v50 }
 0x39d   :  { %5747 = vmatmul.mubr.msk.f32.vlgmr.msra.gmra.mrb[22].mxu0 %vm1197_vm5, %v887_v46  ;;  %5752 = vmatmul.mubr.msk.f32.vlgmr.msra.gmra.mrb[26].mxu1 %vm1197_vm5, %v905_v45 }
 0x39e   :  { %5755 = vmatpush3.msk.msra.mxu0 %vm1201_vm3, %v6114_v36  ;;  %5760 = vmatpush3.msk.msra.mxu1 %vm1201_vm3, %v6116_v37  ;;  %v946_v36 = vrot.slane %v938_v0, %v6092_v7  ;;  %v922_v37 = vrot.slane %v908_v34, %v6083_v50 }
 0x39f   :  { %5756 = vmatprep.mubr.msk.f32.mxu0 %vm5965_vm4, %v5959_v11  ;;  %5761 = vmatprep.mubr.msk.f32.mxu1 %vm5965_vm4, %v5959_v11 }
 0x3a0   :  { %5764 = vmatprep.subr.mxu0 %v5959_v11  ;;  %5769 = vmatprep.subr.mxu1 %v5959_v11  ;;  %v954_v13 = vcombine.low %v922_v37, %v937_v41 }
 0x3a1   :  { %5757 = vmatmul.mubr.msk.f32.vlgmr.msra.gmra.mrb[24].mxu0 %vm1197_vm5, %v896_v62  ;;  %5762 = vmatmul.mubr.msk.f32.vlgmr.msra.gmra.mrb[28].mxu1 %vm1197_vm5, %v906_v3 }
 0x3a2   :  { %5765 = vmatpush3.msk.msra.mxu0 %vm1201_vm3, %v6118_v38  ;;  %5770 = vmatpush3.msk.msra.mxu1 %vm1201_vm3, %v6120_v40  ;;  %v970_v38 = vcombine.high %v946_v36, %v5959_v11  ;;  %v953_v40 = vrot.slane %v939_v6, %v6092_v7 }
 0x3a3   :  { %5766 = vmatprep.mubr.msk.f32.mxu0 %vm5965_vm4, %v5959_v11  ;;  %5771 = vmatprep.mubr.msk.f32.mxu1 %vm5965_vm4, %v5959_v11 }
 0x3a4   :  { %5774 = vmatprep.subr.mxu0 %v5959_v11  ;;  %5779 = vmatprep.subr.mxu1 %v5959_v11  ;;  %v971_v14 = vcombine.high %v953_v40, %v5959_v11 }
 0x3a5   :  { %5767 = vmatmul.mubr.msk.f32.vlgmr.msra.gmra.mrb[26].mxu0 %vm1197_vm5, %v903_v2  ;;  %5772 = vmatmul.mubr.msk.f32.vlgmr.msra.gmra.mrb[30].mxu1 %vm1197_vm5, %v907_v8 }
 0x3a6   :  { %5775 = vmatpush3.msk.msra.mxu0 %vm1201_vm3, %v6262_v26  ;;  %5780 = vmatpush3.msk.msra.mxu1 %vm1201_vm3, %v6264_v28  ;;  %v955_v26 = vcombine.high %v922_v37, %v937_v41  ;;  %v962_v28 = vrot.slane %v954_v13, %v6092_v7 }
 0x3a7   :  { %5776 = vmatprep.mubr.msk.f32.mxu0 %vm5965_vm4, %v5959_v11  ;;  %5781 = vmatprep.mubr.msk.f32.mxu1 %vm5965_vm4, %v5959_v11 }
 0x3a8   :  { %5784 = vmatprep.subr.mxu0 %v5959_v11  ;;  %5789 = vmatprep.subr.mxu1 %v5959_v11 }
 0x3a9   :  { %5777 = vmatmul.mubr.msk.f32.vlgmr.msra.gmra.mrb[28].mxu0 %vm1197_vm5, %v946_v36  ;;  %5782 = vmatmul.mubr.msk.f32.vlgmr.msra.gmra.mrb[32].mxu1 %vm1197_vm5, %v970_v38 }
 0x3aa   :  { %5785 = vmatpush3.msk.msra.mxu0 %vm1201_vm3, %v6266_v27  ;;  %5790 = vmatpush3.msk.msra.mxu1 %vm1201_vm3, %v6268_v30  ;;  %v969_v27 = vrot.slane %v955_v26, %v6092_v7  ;;  %v972_v30 = vcombine.high %v962_v28, %v5959_v11 }
 0x3ab   :  { %5786 = vmatprep.mubr.msk.f32.mxu0 %vm5965_vm4, %v5959_v11  ;;  %5791 = vmatprep.mubr.msk.f32.mxu1 %vm5965_vm4, %v5959_v11 }
 0x3ac   :  { %5794 = vmatprep.subr.mxu0 %v5959_v11  ;;  %5799 = vmatprep.subr.mxu1 %v5959_v11 }
 0x3ad   :  { %5787 = vmatmul.mubr.msk.f32.vlgmr.msra.gmra.mrb[30].mxu0 %vm1197_vm5, %v953_v40  ;;  %5792 = vmatmul.mubr.msk.f32.vlgmr.msra.gmra.mrb[34].mxu1 %vm1197_vm5, %v971_v14 }
 0x3ae   :  { %5795 = vmatpush3.msk.msra.mxu0 %vm1201_vm3, %v6271_v31  ;;  %5800 = vmatpush3.msk.msra.mxu1 %vm1201_vm3, %v6273_v48  ;;  %v973_v31 = vcombine.high %v969_v27, %v5959_v11  ;;  %v602_v48 = vrot.slane %v594_v15, %v6092_v7 }
 0x3af   :  { %5796 = vmatprep.mubr.msk.f32.mxu0 %vm5965_vm4, %v5959_v11  ;;  %5801 = vmatprep.mubr.msk.f32.mxu1 %vm5965_vm4, %v5959_v11 }
 0x3b0   :  { %5804 = vmatprep.subr.mxu0 %v5959_v11  ;;  %5809 = vmatprep.subr.mxu1 %v5959_v11 }
 0x3b1   :  { %5797 = vmatmul.mubr.msk.f32.vlgmr.msra.gmra.mrb[32].mxu0 %vm1197_vm5, %v962_v28  ;;  %5802 = vmatmul.mubr.msk.f32.vlgmr.msra.gmra.mrb[36].mxu1 %vm1197_vm5, %v972_v30 }
 0x3b2   :  { %5805 = vmatpush3.msk.msra.mxu0 %vm1201_vm3, %v6275_v53  ;;  %5810 = vmatpush3.msk.msra.mxu1 %vm1201_vm3, %v6277_v54  ;;  %v626_v53 = vcombine.high %v602_v48, %v5959_v11 }
 0x3b3   :  { %5912 = vmatprep.subr.bf16.mxu0 %v6142_v49  ;;  %5806 = vmatprep.mubr.msk.f32.mxu0 %vm5965_vm4, %v5959_v11 }
 0x3b4   :  { %5811 = vmatprep.mubr.msk.f32.mxu1 %vm5965_vm4, %v5959_v11  ;;  %5821 = vmatprep.subr.mxu1 %v5959_v11 }
 0x3b5   :  { %5807 = vmatmul.mubr.msk.f32.vlgmr.msra.gmra.mrb[34].mxu0 %vm1197_vm5, %v969_v27  ;;  %5812 = vmatmul.mubr.msk.f32.vlgmr.msra.gmra.mrb[38].mxu1 %vm1197_vm5, %v973_v31 }
 0x3b6   :  { %5914 = vmatpush3.bf16.msra.mxu0 %v6142_v49  ;;  %5822 = vmatpush3.msk.msra.mxu1 %vm1201_vm3, %v602_v48 }
 0x3b7   :  { %5818 = vmatprep.mubr.msk.f32.mxu0 %vm108_vm2, %v6072_v39  ;;  %5826 = vmatprep.subr.mxu0 %v5959_v11 }
 0x3b8   :  { %5823 = vmatprep.mubr.msk.f32.mxu1 %vm5965_vm4, %v5959_v11  ;;  %5831 = vmatprep.subr.mxu1 %v5959_v11 }
 0x3b9   :  { %5819 = vmatmul.mubr.msk.f32.vlgmr.msra.gmra.mrb[36].mxu0 %vm108_vm2, %v6076_v42 }
 0x3ba   :  { %5827 = vmatpush3.msk.msra.mxu0 %vm1201_vm3, %v626_v53  ;;  %5828 = vmatprep.mubr.msk.f32.mxu0 %vm5965_vm4, %v5959_v11 }
 0x3bb   :  { %5836 = vmatprep.subr.mxu0 %v5959_v11 }
 0x448   :  { %v1270_v39 = vpop.f32.mrb[4].mxu0 }
 0x449   :  { %v5658_v49 = vpop.f32.mrb[5].mxu0 }
 0x44a   :  { %v1347_v54 = vpop.f32.mrb[8].mxu1 }
 0x44b   :  { %v5663_v16 = vpop.f32.mrb[9].mxu1 }
 0x44c   :  { %v1424_v17 = vpop.f32.mrb[6].mxu0 }
 0x44d   :  { %v5668_v18 = vpop.f32.mrb[7].mxu0 }
 0x44e   :  { %v1501_v63 = vpop.f32.mrb[10].mxu1 }
 0x44f   :  { %v5673_v19 = vpop.f32.mrb[11].mxu1 }
 0x450   :  { %v1578_v20 = vpop.f32.mrb[8].mxu0 }
 0x451   :  { %v5678_v21 = vpop.f32.mrb[9].mxu0 }
 0x452   :  { %v1655_v22 = vpop.f32.mrb[12].mxu1 }
 0x453   :  { %v5683_v25 = vpop.f32.mrb[13].mxu1 }
 0x454   :  { %v1732_v42 = vpop.f32.mrb[10].mxu0 }
 0x455   :  { %v5688_v29 = vpop.f32.mrb[11].mxu0 }
 0x456   :  { %v1809_v55 = vpop.f32.mrb[14].mxu1 }
 0x457   :  { %v5693_v56 = vpop.f32.mrb[15].mxu1 }
 0x45b   :  { %v1886_v57 = vpop.f32.mrb[12].mxu0  ;;  %v1963_v58 = vpop.f32.mrb[16].mxu1 }
 0x45c   :  { %v5698_v59 = vpop.f32.mrb[13].mxu0  ;;  %v5703_v46 = vpop.f32.mrb[17].mxu1 }
 0x460   :  { %v2040_v60 = vpop.f32.mrb[14].mxu0  ;;  %v2117_v61 = vpop.f32.mrb[18].mxu1 }
 0x461   :  { %v5708_v32 = vpop.f32.mrb[15].mxu0  ;;  %v5713_v33 = vpop.f32.mrb[19].mxu1 }
 0x464   :  { %v2194_v62 = vpop.f32.mrb[16].mxu0  ;;  %v2271_v45 = vpop.f32.mrb[20].mxu1 }
 0x465   :  { %v5718_v0 = vpop.f32.mrb[17].mxu0  ;;  %v5723_v34 = vpop.f32.mrb[21].mxu1 }
 0x468   :  { %v2348_v35 = vpop.f32.mrb[18].mxu0  ;;  %v2425_v2 = vpop.f32.mrb[22].mxu1 }
 0x469   :  { %v5728_v3 = vpop.f32.mrb[19].mxu0  ;;  %v5733_v36 = vpop.f32.mrb[23].mxu1 }
 0x46c   :  { %v2500_v37 = vpop.f32.mrb[20].mxu0  ;;  %v2575_v41 = vpop.f32.mrb[24].mxu1 }
 0x46d   :  { %v6509_v6 = vadd.f32 %v2500_v37, %v1270_v39  ;;  %v6511_v8 = vadd.f32 %v2575_v41, %v1347_v54  ;;  %v5738_v38 = vpop.f32.mrb[21].mxu0  ;;  %v5743_v40 = vpop.f32.mrb[25].mxu1 }
 0x470   :  { %v2650_v13 = vpop.f32.mrb[22].mxu0  ;;  %v2725_v26 = vpop.f32.mrb[26].mxu1 }
 0x471   :  { %v6513_v28 = vadd.f32 %v2650_v13, %v1424_v17  ;;  %v6515_v14 = vadd.f32 %v2725_v26, %v1501_v63  ;;  %v5748_v27 = vpop.f32.mrb[23].mxu0  ;;  %v5753_v30 = vpop.f32.mrb[27].mxu1 }
 0x474   :  { %v2800_v15 = vpop.f32.mrb[24].mxu0  ;;  %v2875_v31 = vpop.f32.mrb[28].mxu1 }
 0x475   :  { %v6517_v48 = vadd.f32 %v2800_v15, %v1578_v20  ;;  %v6519_v53 = vadd.f32 %v2875_v31, %v1655_v22  ;;  %v5758_v39 = vpop.f32.mrb[25].mxu0  ;;  %v5763_v49 = vpop.f32.mrb[29].mxu1 }
 0x478   :  { %v2950_v54 = vpop.f32.mrb[26].mxu0  ;;  %v3025_v16 = vpop.f32.mrb[30].mxu1 }
 0x479   :  { %v6521_v18 = vadd.f32 %v2950_v54, %v1732_v42  ;;  %v6523_v19 = vadd.f32 %v3025_v16, %v1809_v55  ;;  %v5768_v17 = vpop.f32.mrb[27].mxu0  ;;  %v5773_v21 = vpop.f32.mrb[31].mxu1  ;;  %v609_v54 = vrot.slane %v595_v9, %v6092_v7 }
 0x47c   :  { %v3100_v63 = vpop.f32.mrb[28].mxu0  ;;  %v3175_v25 = vpop.f32.mrb[32].mxu1 }
 0x47d   :  { %v6525_v29 = vadd.f32 %v3100_v63, %v1886_v57  ;;  %v6527_v56 = vadd.f32 %v3175_v25, %v1963_v58  ;;  %v5778_v20 = vpop.f32.mrb[29].mxu0  ;;  %v5783_v59 = vpop.f32.mrb[33].mxu1 }
 0x480   :  { %v3250_v22 = vpop.f32.mrb[30].mxu0  ;;  %v3325_v46 = vpop.f32.mrb[34].mxu1 }
 0x481   :  { %v6529_v32 = vadd.f32 %v3250_v22, %v2040_v60  ;;  %v6531_v33 = vadd.f32 %v3325_v46, %v2117_v61  ;;  %v5788_v42 = vpop.f32.mrb[31].mxu0  ;;  %v5793_v0 = vpop.f32.mrb[35].mxu1  ;;  %v627_v22 = vcombine.high %v609_v54, %v5959_v11  ;;  %v618_v46 = vrot.slane %v610_v10, %v6092_v7 }
 0x484   :  { %v3400_v55 = vpop.f32.mrb[32].mxu0  ;;  %v3475_v34 = vpop.f32.mrb[36].mxu1 }
 0x485   :  { %v6533_v3 = vadd.f32 %v3400_v55, %v2194_v62  ;;  %v6535_v36 = vadd.f32 %v3475_v34, %v2271_v45  ;;  %v5798_v57 = vpop.f32.mrb[33].mxu0  ;;  %v5803_v37 = vpop.f32.mrb[37].mxu1  ;;  %v625_v55 = vrot.slane %v611_v12, %v6092_v7 }
 0x487   :  { %v629_v12 = vcombine.high %v625_v55, %v5959_v11 }
 0x488   :  { %v3550_v58 = vpop.f32.mrb[34].mxu0  ;;  %v3625_v41 = vpop.f32.mrb[38].mxu1 }
 0x489   :  { %v6537_v38 = vadd.f32 %v3550_v58, %v2348_v35  ;;  %v6539_v40 = vadd.f32 %v3625_v41, %v2425_v2  ;;  %v5808_v60 = vpop.f32.mrb[35].mxu0  ;;  %v5813_v13 = vpop.f32.mrb[39].mxu1  ;;  %v628_v41 = vcombine.high %v618_v46, %v5959_v11 }
 0x48a   :  { %v6547_v35 = vpop.permute.xlu0 %410 }
 0x48c   :  { %v5820_v61 = vpop.f32.mrb[36].mxu0 }
 0x48d   :  { %v3695_v26 = vpop.f32.mrb[37].mxu0  ;;  %v3705_v62 = vmul.f32 2.0, %v5820_v61 }
 0x48e   :  { %v3704_v27 = vmul.f32 2.0, %v3695_v26  ;;  %v423_v16 = vpop.permute.xlu0 %422 }
 0x48f   :  { %v3707_v45 = vsub.f32 %v3705_v62, %v6038_v24  ;;  %v782_v1 = vcombine.low %v6547_v35, %v423_v16  ;;  %v783_v13 = vcombine.high %v6547_v35, %v423_v16 }
 0x490   :  { %v3706_v30 = vsub.f32 %v3704_v27, %v6033_v23 }
 0x491   :  { %v790_v34 = vrot.slane %v782_v1, %v6083_v50  ;;  %v3789_v5 = vrot.slane %v3707_v45, %v6083_v50 }
 0x492   :  { %3710 = vrot.lane.b32.xlu1 %v3706_v30, %s5966_s3  ;;  %v3723_v15 = vrot.slane %v3706_v30, %v6083_v50  ;;  %v3716_v23 = vcombine.high %v3706_v30, %v5959_v11 }
 0x494   :  { %v3730_v20 = vrot.slane %v3716_v23, %v6083_v50 }
 0x496   :  { %416 = vrot.lane.b32.xlu1 %v6128_v44, %s5960_s2 }
 0x49a   :  { %3712 = vrot.lane.b32.xlu1 %v3707_v45, %s5966_s3 }
 0x504   :  { %v3711_v2 = vpop.permute.xlu1 %3710 }
 0x505   :  { %v3731_v31 = vcombine.high %v3711_v2, %v5959_v11  ;;  %v3738_v39 = vrot.slane %v3711_v2, %v6083_v50  ;;  %v3782_v2 = vcombine.high %v3707_v45, %v5959_v11 }
 0x507   :  { %v3746_v49 = vcombine.low %v3723_v15, %v3738_v39  ;;  %v3745_v17 = vrot.slane %v3731_v31, %v6083_v50  ;;  %v3747_v21 = vcombine.high %v3723_v15, %v3738_v39  ;;  %v797_v15 = vrot.slane %v783_v13, %v6083_v50 }
 0x508   :  { %v417_v24 = vpop.permute.xlu1 %416  ;;  %v3796_v16 = vrot.slane %v3782_v2, %v6083_v50 }
 0x509   :  { %v3754_v63 = vrot.slane %v3746_v49, %v6092_v7  ;;  %v766_v25 = vcombine.low %v6128_v44, %v417_v24  ;;  %v3761_v4 = vrot.slane %v3747_v21, %v6092_v7  ;;  %v3762_v9 = vcombine.low %v3730_v20, %v3745_v17 }
 0x50a   :  { %v3763_v57 = vcombine.high %v3730_v20, %v3745_v17  ;;  %v767_v60 = vcombine.high %v6128_v44, %v417_v24 }
 0x50b   :  { %v3778_v59 = vcombine.high %v3754_v63, %v5959_v11  ;;  %5824 = vmatmul.mubr.msk.f32.vlgmr.msra.gmra.mrb[40].mxu1 %vm1197_vm5, %v3754_v63  ;;  %v774_v42 = vrot.slane %v766_v25, %v6083_v50  ;;  %v3770_v10 = vrot.slane %v3762_v9, %v6092_v7  ;;  %v3779_v37 = vcombine.high %v3761_v4, %v5959_v11 }
 0x50c   :  { %5832 = vmatpush3.msk.msra.mxu1 %vm1201_vm3, %v609_v54  ;;  %5833 = vmatprep.mubr.msk.f32.mxu1 %vm5965_vm4, %v5959_v11  ;;  %v3713_v0 = vpop.permute.xlu1 %3712  ;;  %v3777_v61 = vrot.slane %v3763_v57, %v6092_v7  ;;  %v781_v30 = vrot.slane %v767_v60, %v6083_v50  ;;  %v5967_v57 = vmov 1966171168  }
 0x50d   :  { %5829 = vmatmul.mubr.msk.f32.vlgmr.msra.gmra.mrb[38].mxu0 %vm1197_vm5, %v3778_v59  ;;  %5841 = vmatprep.subr.mxu1 %v5959_v11  ;;  %v3804_v58 = vrot.slane %v3713_v0, %v6083_v50  ;;  %v798_v43 = vcombine.low %v774_v42, %v790_v34  ;;  %v3780_v44 = vcombine.high %v3770_v10, %v5959_v11 }
 0x50e   :  { %5837 = vmatpush3.msk.msra.mxu0 %vm1201_vm3, %v627_v22  ;;  %5838 = vmatprep.mubr.msk.f32.mxu0 %vm5965_vm4, %v5959_v11  ;;  %v3797_v26 = vcombine.high %v3713_v0, %v5959_v11  ;;  %v799_v62 = vcombine.high %v774_v42, %v790_v34  ;;  %v3781_v31 = vcombine.high %v3777_v61, %v5959_v11 }
 0x50f   :  { %5834 = vmatmul.mubr.msk.f32.vlgmr.msra.gmra.mrb[42].mxu1 %vm1197_vm5, %v3761_v4  ;;  %5846 = vmatprep.subr.mxu0 %v5959_v11  ;;  %v3812_v27 = vcombine.low %v3789_v5, %v3804_v58  ;;  %v806_v35 = vrot.slane %v798_v43, %v6092_v7  ;;  %v3813_v23 = vcombine.high %v3789_v5, %v3804_v58 }
 0x510   :  { %5842 = vmatpush3.msk.msra.mxu1 %vm1201_vm3, %v618_v46  ;;  %5843 = vmatprep.mubr.msk.f32.mxu1 %vm5965_vm4, %v5959_v11  ;;  %v3811_v39 = vrot.slane %v3797_v26, %v6083_v50  ;;  %v813_v45 = vrot.slane %v799_v62, %v6092_v7  ;;  %v814_v54 = vcombine.low %v781_v30, %v797_v15 }
 0x511   :  { %5839 = vmatmul.mubr.msk.f32.vlgmr.msra.gmra.mrb[40].mxu0 %vm1197_vm5, %v3779_v37  ;;  %5851 = vmatprep.subr.mxu1 %v5959_v11  ;;  %v3820_v49 = vrot.slane %v3812_v27, %v6092_v7  ;;  %v830_v24 = vcombine.high %v806_v35, %v5959_v11  ;;  %v3827_v17 = vrot.slane %v3813_v23, %v6092_v7 }
 0x512   :  { %5847 = vmatpush3.msk.msra.mxu0 %vm1201_vm3, %v628_v41  ;;  %5848 = vmatprep.mubr.msk.f32.mxu0 %vm5965_vm4, %v5959_v11  ;;  %v3828_v21 = vcombine.low %v3796_v16, %v3811_v39  ;;  %v815_v25 = vcombine.high %v781_v30, %v797_v15  ;;  %v822_v20 = vrot.slane %v814_v54, %v6092_v7 }
 0x513   :  { %5844 = vmatmul.mubr.msk.f32.vlgmr.msra.gmra.mrb[44].mxu1 %vm1197_vm5, %v3770_v10  ;;  %5856 = vmatprep.subr.mxu0 %v5959_v11  ;;  %v3844_v63 = vcombine.high %v3820_v49, %v5959_v11  ;;  %v831_v59 = vcombine.high %v813_v45, %v5959_v11  ;;  %v3829_v22 = vcombine.high %v3796_v16, %v3811_v39  ;;  %v5084_v10 = vunpack.c.l.s4 %v5967_v57 }
 0x514   :  { %5852 = vmatpush3.msk.msra.mxu1 %vm1201_vm3, %v625_v55  ;;  %5853 = vmatprep.mubr.msk.f32.mxu1 %vm5965_vm4, %v5959_v11  ;;  %v3836_v1 = vrot.slane %v3828_v21, %v6092_v7  ;;  %v3845_v4 = vcombine.high %v3827_v17, %v5959_v11  ;;  %v829_v9 = vrot.slane %v815_v25, %v6092_v7 }
 0x515   :  { %5849 = vmatmul.mubr.msk.f32.vlgmr.msra.gmra.mrb[42].mxu0 %vm1197_vm5, %v3780_v44  ;;  %5861 = vmatprep.subr.mxu1 %v5959_v11  ;;  %v832_v46 = vcombine.high %v822_v20, %v5959_v11  ;;  %v3843_v42 = vrot.slane %v3829_v22, %v6092_v7  ;;  %v5085_v37 = vunpack.c.0.s8 %v5084_v10  ;;  %v5082_v43 = vcombine.high %v6166_v52, %v6166_v52 }
 0x516   :  { %5857 = vmatpush3.msk.msra.mxu0 %vm1201_vm3, %v629_v12  ;;  %5858 = vmatprep.mubr.msk.f32.mxu0 %vm5965_vm4, %v5959_v11  ;;  %v3846_v0 = vcombine.high %v3836_v1, %v5959_v11  ;;  %v833_v55 = vcombine.high %v829_v9, %v5959_v11  ;;  %v6687_v12 = vsub.s32 0, %v6080_v47 }
 0x517   :  { %5854 = vmatmul.mubr.msk.f32.vlgmr.msra.gmra.mrb[46].mxu1 %vm1197_vm5, %v3777_v61  ;;  %5866 = vmatprep.subr.mxu0 %v5959_v11  ;;  %v3847_v34 = vcombine.high %v3843_v42, %v5959_v11  ;;  %v6679_v58 = vsub.s32 %v5085_v37, %v6080_v47 }
 0x518   :  { %5862 = vmatpush3.msk.msra.mxu1 %vm1201_vm3, %v806_v35  ;;  %5863 = vmatprep.mubr.msk.f32.mxu1 %vm5965_vm4, %v5959_v11 }
 0x519   :  { %5859 = vmatmul.mubr.msk.f32.vlgmr.msra.gmra.mrb[44].mxu0 %vm1197_vm5, %v3781_v31  ;;  %5871 = vmatprep.subr.mxu1 %v5959_v11  ;;  %v5089_v41 = vrot.slane %v6166_v52, %v6679_v58  ;;  %v5096_v13 = vrot.slane %v5082_v43, %v6679_v58  ;;  %v5138_v16 = vrot.slane %v6164_v51, %v6679_v58 }
 0x51a   :  { %5867 = vmatpush3.msk.msra.mxu0 %vm1201_vm3, %v830_v24  ;;  %5868 = vmatprep.mubr.msk.f32.mxu0 %vm5965_vm4, %v5959_v11 }
 0x51b   :  { %5864 = vmatmul.mubr.msk.f32.vlgmr.msra.gmra.mrb[48].mxu1 %vm1197_vm5, %v3820_v49  ;;  %5876 = vmatprep.subr.mxu0 %v5959_v11  ;;  %v5097_v60 = vcombine.high %v5089_v41, %v5089_v41  ;;  %v5105_v5 = vrot.slane %v5089_v41, %v6679_v58  ;;  %v5098_v47 = vcombine.high %v5096_v13, %v5096_v13 }
 0x51c   :  { %5872 = vmatpush3.msk.msra.mxu1 %vm1201_vm3, %v813_v45  ;;  %5873 = vmatprep.mubr.msk.f32.mxu1 %vm5965_vm4, %v5959_v11  ;;  %v5154_v41 = vrot.slane %v5138_v16, %v6679_v58 }
 0x51d   :  { %5869 = vmatmul.mubr.msk.f32.vlgmr.msra.gmra.mrb[46].mxu0 %vm1197_vm5, %v3844_v63  ;;  %5881 = vmatprep.subr.mxu1 %v5959_v11  ;;  %v5127_v44 = vcombine.high %v5105_v5, %v5105_v5  ;;  %v5183_v27 = vrot.slane %v5105_v5, %v6687_v12 }
 0x51e   :  { %5877 = vmatpush3.msk.msra.mxu0 %vm1201_vm3, %v831_v59  ;;  %5878 = vmatprep.mubr.msk.f32.mxu0 %vm5965_vm4, %v5959_v11 }
 0x51f   :  { %5874 = vmatmul.mubr.msk.f32.vlgmr.msra.gmra.mrb[50].mxu1 %vm1197_vm5, %v3827_v17  ;;  %5886 = vmatprep.subr.mxu0 %v5959_v11  ;;  %v5191_v49 = vrot.slane %v5127_v44, %v6687_v12 }
 0x520   :  { %5882 = vmatpush3.msk.msra.mxu1 %vm1201_vm3, %v822_v20  ;;  %5883 = vmatprep.mubr.msk.f32.mxu1 %vm5965_vm4, %v5959_v11 }
 0x521   :  { %5879 = vmatmul.mubr.msk.f32.vlgmr.msra.gmra.mrb[48].mxu0 %vm1197_vm5, %v3845_v4  ;;  %5891 = vmatprep.subr.mxu1 %v5959_v11 }
 0x522   :  { %5887 = vmatpush3.msk.msra.mxu0 %vm1201_vm3, %v832_v46  ;;  %5888 = vmatprep.mubr.msk.f32.mxu0 %vm5965_vm4, %v5959_v11  ;;  %v5131_v46 = vcombine.high %v6164_v51, %v6164_v51 }
 0x523   :  { %5884 = vmatmul.mubr.msk.f32.vlgmr.msra.gmra.mrb[52].mxu1 %vm1197_vm5, %v3836_v1  ;;  %5896 = vmatprep.subr.mxu0 %v5959_v11 }
 0x524   :  { %5892 = vmatpush3.msk.msra.mxu1 %vm1201_vm3, %v829_v9  ;;  %5893 = vmatprep.mubr.msk.f32.mxu1 %vm5965_vm4, %v5959_v11 }
 0x525   :  { %5889 = vmatmul.mubr.msk.f32.vlgmr.msra.gmra.mrb[50].mxu0 %vm1197_vm5, %v3846_v0 }
 0x526   :  { %5897 = vmatpush3.msk.msra.mxu0 %vm1201_vm3, %v833_v55  ;;  %5898 = vmatprep.mubr.msk.f32.mxu0 %vm5965_vm4, %v5959_v11  ;;  %v5119_v11 = vrot.slane %v5097_v60, %v6679_v58 }
 0x527   :  { %5894 = vmatmul.mubr.msk.f32.vlgmr.msra.gmra.mrb[54].mxu1 %vm1197_vm5, %v3843_v42  ;;  %v5146_v42 = vcombine.high %v5138_v16, %v5138_v16 }
 0x528   :  { %v5187_v2 = vrot.slane %v5119_v11, %v6687_v12  ;;  %v5129_v54 = vcombine.high %v5119_v11, %v5119_v11 }
 0x529   :  { %5899 = vmatmul.mubr.msk.f32.vlgmr.msra.gmra.mrb[52].mxu0 %vm1197_vm5, %v3847_v34  ;;  %v5168_v44 = vrot.slane %v5146_v42, %v6679_v58 }
 0x52a   :  { %v5195_v25 = vrot.slane %v5129_v54, %v6687_v12 }
 0x52b   :  { %v5178_v16 = vcombine.high %v5168_v44, %v5168_v44 }
 0x5de   :  { %v3920_v61 = vpop.f32.mrb[40].mxu1 }
 0x5df   :  { %v5064_v26 = vadd.f32 %v3920_v61, %v6509_v6  ;;  %v5825_v30 = vpop.f32.mrb[41].mxu1  ;;  %v5112_v6 = vrot.slane %v5096_v13, %v6679_v58  ;;  %v5145_v61 = vrot.slane %v5131_v46, %v6679_v58 }
 0x5e0   :  { %v3996_v62 = vpop.f32.mrb[38].mxu0 }
 0x5e1   :  { %v5260_v35 = vadd.f32 %v5183_v27, %v5064_v26  ;;  %v5065_v52 = vadd.f32 %v3996_v62, %v6511_v8  ;;  %v5830_v15 = vpop.f32.mrb[39].mxu0  ;;  %v5126_v8 = vrot.slane %v5098_v47, %v6679_v58  ;;  %v5128_v59 = vcombine.high %v5112_v6, %v5112_v6 }
 0x5e2   :  { %v4072_v31 = vpop.f32.mrb[42].mxu1  ;;  %v5199_v4 = vrot.slane %v5112_v6, %v6687_v12 }
 0x5e3   :  { %v5261_v39 = vadd.f32 %v5187_v2, %v5065_v52  ;;  %v5066_v23 = vadd.f32 %v4072_v31, %v6513_v28  ;;  %v5835_v45 = vpop.f32.mrb[43].mxu1  ;;  %v5203_v55 = vrot.slane %v5126_v8, %v6687_v12  ;;  %v5130_v37 = vcombine.high %v5126_v8, %v5126_v8 }
 0x5e4   :  { %v4148_v17 = vpop.f32.mrb[40].mxu0  ;;  %v5176_v52 = vcombine.high %v5154_v41, %v5154_v41  ;;  %v5219_v45 = vrot.slane %v5168_v44, %v6687_v12 }
 0x5e5   :  { %v5262_v24 = vadd.f32 %v5191_v49, %v5066_v23  ;;  %v5067_v63 = vadd.f32 %v4148_v17, %v6515_v14  ;;  %v5840_v20 = vpop.f32.mrb[41].mxu0  ;;  %v5211_v30 = vrot.slane %v5130_v37, %v6687_v12  ;;  %v5147_v23 = vcombine.high %v5145_v61, %v5145_v61 }
 0x5e6   :  { %v4224_v28 = vpop.f32.mrb[44].mxu1  ;;  %v5161_v17 = vrot.slane %v5145_v61, %v6679_v58 }
 0x5e7   :  { %v5276_v21 = vcombine.low %v5260_v35, %v5262_v24  ;;  %v5263_v22 = vadd.f32 %v5195_v25, %v5067_v63  ;;  %v5068_v1 = vadd.f32 %v4224_v28, %v6517_v48  ;;  %v5845_v9 = vpop.f32.mrb[45].mxu1  ;;  %v5207_v48 = vrot.slane %v5128_v59, %v6687_v12 }
 0x5e8   :  { %v4300_v0 = vpop.f32.mrb[42].mxu0 }
 0x5e9   :  { %v5284_v34 = vcombine.low %v5261_v39, %v5263_v22  ;;  %v5264_v14 = vadd.f32 %v5199_v4, %v5068_v1  ;;  %v5069_v57 = vadd.f32 %v4300_v0, %v6519_v53  ;;  %v5850_v10 = vpop.f32.mrb[43].mxu0  ;;  %v5283_v43 = vrot.slane %v5276_v21, %v6083_v50 }
 0x5ea   :  { %v4376_v60 = vpop.f32.mrb[46].mxu1  ;;  %v5223_v21 = vrot.slane %v5176_v52, %v6687_v12  ;;  %v5175_v22 = vrot.slane %v5147_v23, %v6679_v58  ;;  %v5227_v4 = vrot.slane %v5178_v16, %v6687_v12  ;;  %v5231_v0 = vrot.slane %v5161_v17, %v6687_v12 }
 0x5eb   :  { %v5291_v5 = vrot.slane %v5284_v34, %v6083_v50  ;;  %v5265_v51 = vadd.f32 %v5203_v55, %v5069_v57  ;;  %v5070_v11 = vadd.f32 %v4376_v60, %v6521_v18  ;;  %v5855_v13 = vpop.f32.mrb[47].mxu1  ;;  %v5215_v18 = vrot.slane %v5154_v41, %v6687_v12 }
 0x5ec   :  { %v4452_v53 = vpop.f32.mrb[44].mxu0  ;;  %v5177_v55 = vcombine.high %v5161_v17, %v5161_v17  ;;  %v5235_v58 = vrot.slane %v5175_v22, %v6687_v12 }
 0x5ed   :  { %v5266_v26 = vadd.f32 %v5207_v48, %v5070_v11  ;;  %v5071_v27 = vadd.f32 %v4452_v53, %v6523_v19  ;;  %v5860_v62 = vpop.f32.mrb[45].mxu0  ;;  %v5308_v35 = vcombine.low %v5283_v43, %v5291_v5  ;;  %v5179_v5 = vcombine.high %v5175_v22, %v5175_v22 }
 0x5ee   :  { %v4528_v2 = vpop.f32.mrb[48].mxu1  ;;  %v5239_v11 = vrot.slane %v5177_v55, %v6687_v12 }
 0x5ef   :  { %v5292_v15 = vcombine.low %v5264_v14, %v5266_v26  ;;  %v5267_v47 = vadd.f32 %v5211_v30, %v5071_v27  ;;  %v5072_v31 = vadd.f32 %v4528_v2, %v6525_v29  ;;  %v5865_v39 = vpop.f32.mrb[49].mxu1 }
 0x5f0   :  { %v4604_v49 = vpop.f32.mrb[46].mxu0 }
 0x5f1   :  { %v5300_v54 = vcombine.low %v5265_v51, %v5267_v47  ;;  %v5268_v6 = vadd.f32 %v5215_v18, %v5072_v31  ;;  %v5073_v19 = vadd.f32 %v4604_v49, %v6527_v56  ;;  %v5870_v24 = vpop.f32.mrb[47].mxu0  ;;  %v5299_v29 = vrot.slane %v5292_v15, %v6083_v50 }
 0x5f2   :  { %v4680_v8 = vpop.f32.mrb[50].mxu1 }
 0x5f3   :  { %v5307_v63 = vrot.slane %v5300_v54, %v6083_v50  ;;  %v5269_v25 = vadd.f32 %v5219_v45, %v5073_v19  ;;  %v5074_v20 = vadd.f32 %v4680_v8, %v6529_v32  ;;  %v5875_v28 = vpop.f32.mrb[51].mxu1 }
 0x5f4   :  { %v4756_v59 = vpop.f32.mrb[48].mxu0 }
 0x5f5   :  { %v5270_v1 = vadd.f32 %v5223_v21, %v5074_v20  ;;  %v5075_v56 = vadd.f32 %v4756_v59, %v6531_v33  ;;  %v5880_v9 = vpop.f32.mrb[49].mxu0  ;;  %v5316_v46 = vcombine.low %v5299_v29, %v5307_v63  ;;  %v5315_v33 = vrot.slane %v5308_v35, %v6092_v7 }
 0x5f6   :  { %v4832_v42 = vpop.f32.mrb[52].mxu1  ;;  %v5243_v35 = vrot.slane %v5179_v5, %v6687_v12 }
 0x5f7   :  { %v5326_v34 = vcombine.low %v5268_v6, %v5270_v1  ;;  %v5271_v14 = vadd.f32 %v5227_v4, %v5075_v56  ;;  %v5076_v57 = vadd.f32 %v4832_v42, %v6533_v3  ;;  %v5885_v32 = vpop.f32.mrb[53].mxu1  ;;  %v5323_v10 = vrot.slane %v5316_v46, %v6092_v7 }
 0x5f8   :  { %v4908_v37 = vpop.f32.mrb[50].mxu0 }
 0x5f9   :  { %v5334_v41 = vcombine.low %v5269_v25, %v5271_v14  ;;  %v5272_v60 = vadd.f32 %v5231_v0, %v5076_v57  ;;  %v5077_v48 = vadd.f32 %v4908_v37, %v6535_v36  ;;  %v5890_v43 = vpop.f32.mrb[51].mxu0  ;;  %v5325_v13 = vcombine.high %v5315_v33, %v5323_v10 }
 0x5fa   :  { %v4984_v51 = vpop.f32.mrb[54].mxu1  ;;  %v5324_v61 = vcombine.low %v5315_v33, %v5323_v10  ;;  %v5333_v3 = vrot.slane %v5326_v34, %v6083_v50 }
 0x5fb   :  { %v5341_v44 = vrot.slane %v5334_v41, %v6083_v50  ;;  %v5273_v53 = vadd.f32 %v5235_v58, %v5077_v48  ;;  %v5078_v26 = vadd.f32 %v4984_v51, %v6537_v38  ;;  %v5895_v27 = vpop.f32.mrb[55].mxu1  ;;  %5378 = vrot.lane.b32.xlu0 %v5325_v13, %s5962_s0 }
 0x5fc   :  { %v5060_v30 = vpop.f32.mrb[52].mxu0 }
 0x5fd   :  { %v5274_v62 = vadd.f32 %v5239_v11, %v5078_v26  ;;  %v5079_v36 = vadd.f32 %v5060_v30, %v6539_v40  ;;  %v5900_v52 = vpop.f32.mrb[53].mxu0  ;;  %v5358_v2 = vcombine.low %v5333_v3, %v5341_v44 }
 0x5ff   :  { %v5342_v15 = vcombine.low %v5272_v60, %v5274_v62  ;;  %v5275_v47 = vadd.f32 %v5243_v35, %v5079_v36  ;;  %v5365_v38 = vrot.slane %v5358_v2, %v6092_v7 }
 0x601   :  { %v5350_v31 = vcombine.low %v5273_v53, %v5275_v47  ;;  %v5349_v18 = vrot.slane %v5342_v15, %v6083_v50 }
 0x603   :  { %v5357_v39 = vrot.slane %v5350_v31, %v6083_v50 }
 0x605   :  { %v5366_v23 = vcombine.low %v5349_v18, %v5357_v39 }
 0x607   :  { %v5373_v49 = vrot.slane %v5366_v23, %v6092_v7 }
 0x609   :  { %v5375_v45 = vcombine.high %v5365_v38, %v5373_v49  ;;  %v5374_v54 = vcombine.low %v5365_v38, %v5373_v49 }
 0x60b   :  { %5380 = vrot.lane.b32.xlu1 %v5375_v45, %s5962_s0 }
 0x66d   :  { %v5379_v40 = vpop.permute.xlu0 %5378 }
 0x66e   :  { %v5385_v12 = vsel %vm5384_vm6, %v5324_v61, %v5379_v40 }
 0x66f   :  { %5388 = vst.msk [vmem:[#allocation2] sm:$0xff] %vm5387_vm7, %v5385_v12 }
 0x67d   :  { %v5381_v6 = vpop.permute.xlu1 %5380 }
 0x67e   :  { %v5386_v19 = vsel %vm5384_vm6, %v5374_v54, %v5381_v6 }
 0x67f   :  { %5389 = vst.msk [vmem:[#allocation2 + $0x8] sm:$0xff] %vm5387_vm7, %v5386_v19 }
 0x680   :  { %5946 = shalt.err (!%p5943_p4)
}
 0x681   :  { %s5947_s10 = scalar_lea.hbm %s6764_s4, 256 }
 0x682   :  { %p5948_p5 = scmp.ne.s32.totalorder %s6764_s4, %s5947_s10  ;;  %p5951_p6 = scmp.lt.u32.totalorder %s5947_s10, %s6764_s4 }
 0x684   :  { %p5953_p7 = pnand %p5951_p6, %p5948_p5 }
 0x686   :  { %5956 = shalt.err (!%p5953_p7)
}
 0x687   :  { %s5969_s15 = smov 128   ;;  %s5970_s16 = smov 8  }
 0x688   :  { %5401 = dma.vmem_to_hbm [thread:$0]  %s5396_s6, 256, %s6764_s4, [#allocation3], %s5969_s15, %s5969_s15, %s5970_s16  }
 0x689   :  { %5957 = dma.done.wait [#allocation3], 256  }
 0x68a   :  { %5958 = vsyncadd [#allocation3], 4294967040 }
 0x68b   :  { %5405 = vsyncpa [#allocation3], 1 }

</bundles_post_ra>
